<compile_context>
chip_gen: v7x
topology: tpu7x:2x2x1
jax: 0.10.0
libtpu: 0.0.40
codegen_flags: <defaults>
</compile_context>

<pallas_src>
import jax
import jax.numpy as jnp
from jax.experimental import pallas as pl
from jax.experimental.pallas import tpu as pltpu

HID = 32   # hidden size of both LSTMs (hardcoded to 32 in the PyTorch module)
NOUT = 5   # final_dense output width


# ----------------------------------------------------------------------------
# Fused kernel
# ----------------------------------------------------------------------------
def text_model_hc_kernel(x_ref, wih1_ref, b1_ref, wd_ref, bd_ref,
                         wih2_ref, b2_ref, whh_ref, wf_ref, bf_ref,
                         out_ref, feat_ref):
    B, T, F = x_ref.shape
    H = whh_ref.shape[0] // 4
    rows = 4 * B

    # ---- hoisted input projections (all timesteps, both directions, one dot).
    x2d = x_ref[...].reshape(B * T, F)
    xp1 = (jnp.dot(x2d, wih1_ref[...], preferred_element_type=jnp.float32)
           + b1_ref[...]).reshape(B, T, 8 * H)              # lstm1: [fwd | bwd]
    d = jnp.maximum(
        jnp.dot(x2d, wd_ref[...], preferred_element_type=jnp.float32)
        + bd_ref[...], 0.0)                                  # dense + ReLU
    xp2 = (jnp.dot(d, wih2_ref[...], preferred_element_type=jnp.float32)
           + b2_ref[...]).reshape(B, T, 8 * H)               # lstm2: [fwd | bwd]

    # ---- bulk pre-pass: per-step gate inputs, rows = [l1f; l1b; l2f; l2b],
    #      backward rows already time-reversed (T is small & static).
    gxs = []
    for t in range(T):
        gxs.append(jnp.concatenate(
            [xp1[:, t, 0:4 * H], xp1[:, T - 1 - t, 4 * H:8 * H],
             xp2[:, t, 0:4 * H], xp2[:, T - 1 - t, 4 * H:8 * H]], axis=0))

    # ---- block-diagonal mask used to re-pad the (4B, 4H) recurrent state.
    r = jax.lax.broadcasted_iota(jnp.int32, (rows, 4 * H), 0)
    c = jax.lax.broadcasted_iota(jnp.int32, (rows, 4 * H), 1)
    blk = None
    for rb in range(4):
        m = ((r >= rb * B) & (r < (rb + 1) * B)
             & (c >= rb * H) & (c < (rb + 1) * H))
        blk = m if blk is None else (blk | m)
    blk_mask = blk.astype(jnp.float32)

    whh_bf = whh_ref[...].astype(jnp.bfloat16)               # hoisted cast

    # ---- fused recurrence: one (8,128)@(128,128) MXU step serves all four
    #      layer/direction combinations.  Gate order: i, f, g, o (PyTorch).
    c_state = jnp.zeros((rows, H), jnp.float32)
    h_steps = []
    h_pad_bf = None
    for s in range(T):
        if s == 0:
            gates = gxs[0]                                   # h0 == 0: skip matmul
        else:
            gates = gxs[s] + jnp.dot(h_pad_bf, whh_bf,
                                     preferred_element_type=jnp.float32)
        sg = jax.nn.sigmoid(gates)                           # ONE full-(8,128) EUP op
        i = sg[:, 0:H]
        f = sg[:, H:2 * H]
        g = 2.0 * sg[:, 2 * H:3 * H] - 1.0                   # tanh(a) = 2*sigmoid(2a)-1
        o = sg[:, 3 * H:4 * H]
        c_state = f * c_state + i * g
        h = o * jnp.tanh(c_state)                            # (4B, H)
        h_steps.append(h)
        # re-pad state to block-diagonal (4B, 4H) layout for the next matmul
        h_pad_bf = (jnp.concatenate([h, h, h, h], axis=1)
                    * blk_mask).astype(jnp.bfloat16)

    # ---- gather per-time outputs straight from vregs (no VMEM scratch).
    xl_t, xd_t = [], []
    for t in range(T):
        hf = h_steps[t]              # forward hidden states computed at time t
        hb = h_steps[T - 1 - t]      # backward hidden states that belong to time t
        xl_t.append(jnp.concatenate([hf[0:B], hb[B:2 * B]], axis=1))
        xd_t.append(jnp.concatenate([hf[2 * B:3 * B], hb[3 * B:4 * B]], axis=1))
    x_lstm = jnp.stack(xl_t, axis=1)                         # (B, T, 2H)
    x_dl = jnp.stack(xd_t, axis=1)                           # (B, T, 2H)

    # ---- attention(query = key = x_lstm): softmax(q k^T) @ k   (no 1/sqrt(d),
    #      matching the PyTorch Attention module).
    s_att = jnp.einsum('btd,bsd->bts', x_lstm, x_lstm,
                       preferred_element_type=jnp.float32)   # (B, T, T)
    s_att = s_att - jnp.max(s_att, axis=-1, keepdims=True)
    p_att = jnp.exp(s_att)
    p_att = p_att * pl.reciprocal(jnp.sum(p_att, axis=-1, keepdims=True),
                                  approx=True)
    x_att = jnp.einsum('bts,bsd->btd', p_att, x_lstm,
                       preferred_element_type=jnp.float32)   # (B, T, 2H)

    # ---- head: sum branches, mean / unbiased std over T (torch.std default),
    #      concat -> feat, sigmoid(final_dense(feat)).
    ssum = x_lstm + x_att + x_dl
    mean = jnp.sum(ssum, axis=1) * (1.0 / T)                 # (B, 2H)
    diff = ssum - mean[:, None, :]
    var = jnp.sum(diff * diff, axis=1) * (1.0 / (T - 1))
    feat = jnp.concatenate([mean, jnp.sqrt(var)], axis=-1)   # (B, 4H)
    feat_ref[0] = feat
    out_ref[0] = jax.nn.sigmoid(
        jnp.dot(feat, wf_ref[...], preferred_element_type=jnp.float32)
        + bf_ref[...])


# ----------------------------------------------------------------------------
# Wrapper
# ----------------------------------------------------------------------------
def text_model_hc_forward(x, packed_params, *, batch_blocks=1):
    """batch_blocks=1: whole model in one program (best on v5e/v6e, 1 TC/chip).
    batch_blocks=2 on v7x shards the batch across the two TensorCores."""
    B, T, F = x.shape
    H = HID
    assert B % batch_blocks == 0 and T >= 2
    Bp = B // batch_blocks

    def full_spec(arr):
        zeros = (0,) * arr.ndim
        return pl.BlockSpec(arr.shape, lambda i, z=zeros: z)

    in_specs = [pl.BlockSpec((Bp, T, F), lambda i: (i, 0, 0))]
    in_specs += [full_spec(a) for a in packed_params]
    out_specs = (pl.BlockSpec((1, Bp, NOUT), lambda i: (i, 0, 0)),
                 pl.BlockSpec((1, Bp, 4 * H), lambda i: (i, 0, 0)))
    out_shape = (jax.ShapeDtypeStruct((batch_blocks, Bp, NOUT), jnp.float32),
                 jax.ShapeDtypeStruct((batch_blocks, Bp, 4 * H), jnp.float32))

    out, feat = pl.pallas_call(
        text_model_hc_kernel,
        grid=(batch_blocks,),
        in_specs=in_specs,
        out_specs=out_specs,
        out_shape=out_shape,
        compiler_params=pltpu.CompilerParams(
            dimension_semantics=("parallel",)),
    )(x, *packed_params)
    return out.reshape(B, NOUT), feat.reshape(B, 4 * H)


# ----------------------------------------------------------------------------
# Parameters: PyTorch-convention synthetic weights + packing to kernel layout.
# ----------------------------------------------------------------------------
def init_reference_params(key, feat_dim, hid=HID):
    names = []
    for layer, in_dim in (("lstm1", feat_dim), ("lstm2", 2 * hid)):
        for dr in ("fwd", "bwd"):
            names += [(f"{layer}_{dr}_w_ih", (4 * hid, in_dim)),
                      (f"{layer}_{dr}_w_hh", (4 * hid, hid)),
                      (f"{layer}_{dr}_b_ih", (4 * hid,)),
                      (f"{layer}_{dr}_b_hh", (4 * hid,))]
    names += [("dense_w", (2 * hid, feat_dim)), ("dense_b", (2 * hid,)),
              ("final_w", (NOUT, 4 * hid)), ("final_b", (NOUT,))]
    keys = jax.random.split(key, len(names))
    return {n: (0.1 * jax.random.normal(k, s)).astype(jnp.float32)
            for (n, s), k in zip(names, keys)}


def pack_params(p, hid=HID):
    """Transpose / fuse the PyTorch-layout weights into the kernel layouts.
    The g-gate columns are pre-scaled by 2 so the kernel can use
    tanh(a) = 2*sigmoid(2a) - 1 (one full-width sigmoid per recurrent step)."""
    H = hid

    def scale_g(m):   # last axis is 4H in gate order (i, f, g, o)
        return m.at[..., 2 * H:3 * H].multiply(2.0)

    def in_proj(layer):
        w = jnp.concatenate([scale_g(p[f"{layer}_fwd_w_ih"].T),
                             scale_g(p[f"{layer}_bwd_w_ih"].T)], axis=1)
        b = jnp.concatenate(
            [scale_g(p[f"{layer}_fwd_b_ih"] + p[f"{layer}_fwd_b_hh"]),
             scale_g(p[f"{layer}_bwd_b_ih"] + p[f"{layer}_bwd_b_hh"])])
        return w, b[None, :]

    wih1, b1 = in_proj("lstm1")
    wih2, b2 = in_proj("lstm2")
    whh = jnp.concatenate(
        [scale_g(p[f"{layer}_{dr}_w_hh"].T)
         for layer, dr in (("lstm1", "fwd"), ("lstm1", "bwd"),
                           ("lstm2", "fwd"), ("lstm2", "bwd"))], axis=0)
    return (wih1, b1,
            p["dense_w"].T, p["dense_b"][None, :],
            wih2, b2, whh,
            p["final_w"].T, p["final_b"][None, :])


# ----------------------------------------------------------------------------
# Pure-JAX reference of the PyTorch module (for a correctness sanity check).
# ----------------------------------------------------------------------------
def reference_forward(x, p, hid=HID):
    H = hid
    B, T, _ = x.shape

    def lstm_dir(xseq, w_ih, w_hh, b_ih, b_hh, reverse):
        h = jnp.zeros((B, H), jnp.float32)
        c = jnp.zeros((B, H), jnp.float32)
        outs = [None] * T
        order = range(T - 1, -1, -1) if reverse else range(T)
        for t in order:
            gate = xseq[:, t] @ w_ih.T + h @ w_hh.T + b_ih + b_hh
            i = jax.nn.sigmoid(gate[:, 0:H])
            f = jax.nn.sigmoid(gate[:, H:2 * H])
            g = jnp.tanh(gate[:, 2 * H:3 * H])
            o = jax.nn.sigmoid(gate[:, 3 * H:4 * H])
            c = f * c + i * g
            h = o * jnp.tanh(c)
            outs[t] = h
        return jnp.stack(outs, axis=1)

    def bilstm(xseq, layer):
        fwd = lstm_dir(xseq, p[f"{layer}_fwd_w_ih"], p[f"{layer}_fwd_w_hh"],
                       p[f"{layer}_fwd_b_ih"], p[f"{layer}_fwd_b_hh"], False)
        bwd = lstm_dir(xseq, p[f"{layer}_bwd_w_ih"], p[f"{layer}_bwd_w_hh"],
                       p[f"{layer}_bwd_b_ih"], p[f"{layer}_bwd_b_hh"], True)
        return jnp.concatenate([fwd, bwd], axis=-1)

    x_lstm = bilstm(x, "lstm1")
    scores = jnp.einsum('btd,bsd->bts', x_lstm, x_lstm)
    x_att = jnp.einsum('bts,bsd->btd', jax.nn.softmax(scores, axis=-1), x_lstm)
    x_dl = bilstm(jax.nn.relu(x @ p["dense_w"].T + p["dense_b"]), "lstm2")
    ssum = x_lstm + x_att + x_dl
    mean = jnp.mean(ssum, axis=1)
    std = jnp.std(ssum, axis=1, ddof=1)
    feat = jnp.concatenate([mean, std], axis=1)
    out = jax.nn.sigmoid(feat @ p["final_w"].T + p["final_b"])
    return out, feat


if __name__ == "__main__":
    key = jax.random.PRNGKey(0)
    kx, kp = jax.random.split(key)
    B, T, F = 2, 8, 16
    x = jax.random.normal(kx, (B, T, F), dtype=jnp.float32)
    ref_params = init_reference_params(kp, F, HID)
    packed = pack_params(ref_params, HID)

    # On v7x (2 TensorCores / chip) shard the batch over a parallel grid;
    # on 1-TC chips keep the whole model in one program.
    try:
        kind = jax.devices()[0].device_kind.lower()
    except Exception:
        kind = ""
    batch_blocks = 2 if (("v7" in kind or "tpu7" in kind) and B % 2 == 0) else 1

    fwd = jax.jit(
        lambda xx, pp: text_model_hc_forward(xx, pp, batch_blocks=batch_blocks))
    out, feat = fwd(x, packed)
    jax.block_until_ready((out, feat))

    assert out.shape == (B, NOUT) and out.dtype == jnp.float32
    assert feat.shape == (B, 4 * HID) and feat.dtype == jnp.float32

    # Sanity check against the pure-JAX f32 reference (loose tolerance covers
    # the bf16 recurrent-matmul operands and the approx softmax reciprocal).
    out_ref, feat_ref = reference_forward(x, ref_params, HID)
    assert bool(jnp.allclose(out, out_ref, atol=2e-2, rtol=2e-2))
    assert bool(jnp.allclose(feat, feat_ref, atol=2e-2, rtol=2e-2))

    print("KERNEL_OK")
</pallas_src>

<mosaic_0001>
module attributes {stable_mosaic.version = 11 : i64} {
  func.func @text_model_hc_kernel(%arg0: i32, %arg1: memref<2x8x16xf32, #tpu.memory_space<vmem>>, %arg2: memref<16x256xf32, #tpu.memory_space<vmem>>, %arg3: memref<1x256xf32, #tpu.memory_space<vmem>>, %arg4: memref<16x64xf32, #tpu.memory_space<vmem>>, %arg5: memref<1x64xf32, #tpu.memory_space<vmem>>, %arg6: memref<64x256xf32, #tpu.memory_space<vmem>>, %arg7: memref<1x256xf32, #tpu.memory_space<vmem>>, %arg8: memref<128x128xf32, #tpu.memory_space<vmem>>, %arg9: memref<128x5xf32, #tpu.memory_space<vmem>>, %arg10: memref<1x5xf32, #tpu.memory_space<vmem>>, %arg11: memref<1x2x5xf32, #tpu.memory_space<vmem>>, %arg12: memref<1x2x128xf32, #tpu.memory_space<vmem>>) attributes {dimension_semantics = [#tpu.dimension_semantics<parallel>], iteration_bounds = array<i64: 1>, scalar_prefetch = 0 : i64, scratch_operands = 0 : i64, tpu.core_type = #tpu.core_type<tc>, window_params = [{transform_indices = @transform_0, window_bounds = array<i64: 2, 8, 16>}, {pipeline_mode = #tpu.pipeline_mode<synchronous>, transform_indices = @transform_1, window_bounds = array<i64: 16, 256>}, {pipeline_mode = #tpu.pipeline_mode<synchronous>, transform_indices = @transform_2, window_bounds = array<i64: 1, 256>}, {pipeline_mode = #tpu.pipeline_mode<synchronous>, transform_indices = @transform_3, window_bounds = array<i64: 16, 64>}, {pipeline_mode = #tpu.pipeline_mode<synchronous>, transform_indices = @transform_4, window_bounds = array<i64: 1, 64>}, {pipeline_mode = #tpu.pipeline_mode<synchronous>, transform_indices = @transform_5, window_bounds = array<i64: 64, 256>}, {pipeline_mode = #tpu.pipeline_mode<synchronous>, transform_indices = @transform_6, window_bounds = array<i64: 1, 256>}, {pipeline_mode = #tpu.pipeline_mode<synchronous>, transform_indices = @transform_7, window_bounds = array<i64: 128, 128>}, {pipeline_mode = #tpu.pipeline_mode<synchronous>, transform_indices = @transform_8, window_bounds = array<i64: 128, 5>}, {pipeline_mode = #tpu.pipeline_mode<synchronous>, transform_indices = @transform_9, window_bounds = array<i64: 1, 5>}, {transform_indices = @transform_10, window_bounds = array<i64: 1, 2, 5>}, {transform_indices = @transform_11, window_bounds = array<i64: 1, 2, 128>}]} {
    %c0 = arith.constant 0 : index
    %c0_0 = arith.constant 0 : index
    %c0_1 = arith.constant 0 : index
    %0 = vector.load %arg1[%c0, %c0_0, %c0_1] : memref<2x8x16xf32, #tpu.memory_space<vmem>>, vector<2x8x16xf32>
    %1 = vector.shape_cast %0 : vector<2x8x16xf32> to vector<16x16xf32>
    %c0_2 = arith.constant 0 : index
    %c0_3 = arith.constant 0 : index
    %2 = vector.load %arg2[%c0_2, %c0_3] : memref<16x256xf32, #tpu.memory_space<vmem>>, vector<16x256xf32>
    %cst = arith.constant dense<0.000000e+00> : vector<16x256xf32>
    %3 = tpu.matmul %1, %2, %cst {dimension_numbers = #tpu.dot_dimension_numbers<[1], [0], [0], [1], [0, 0, 1, 1], [], []>} : vector<16x16xf32>, vector<16x256xf32>, vector<16x256xf32> -> vector<16x256xf32>
    %c0_4 = arith.constant 0 : index
    %c0_5 = arith.constant 0 : index
    %4 = vector.load %arg3[%c0_4, %c0_5] : memref<1x256xf32, #tpu.memory_space<vmem>>, vector<1x256xf32>
    %5 = vector.broadcast %4 : vector<1x256xf32> to vector<16x256xf32>
    %6 = arith.addf %3, %5 : vector<16x256xf32>
    %7 = vector.shape_cast %6 : vector<16x256xf32> to vector<2x8x256xf32>
    %c0_6 = arith.constant 0 : index
    %c0_7 = arith.constant 0 : index
    %8 = vector.load %arg4[%c0_6, %c0_7] : memref<16x64xf32, #tpu.memory_space<vmem>>, vector<16x64xf32>
    %cst_8 = arith.constant dense<0.000000e+00> : vector<16x64xf32>
    %9 = tpu.matmul %1, %8, %cst_8 {dimension_numbers = #tpu.dot_dimension_numbers<[1], [0], [0], [1], [0, 0, 1, 1], [], []>} : vector<16x16xf32>, vector<16x64xf32>, vector<16x64xf32> -> vector<16x64xf32>
    %c0_9 = arith.constant 0 : index
    %c0_10 = arith.constant 0 : index
    %10 = vector.load %arg5[%c0_9, %c0_10] : memref<1x64xf32, #tpu.memory_space<vmem>>, vector<1x64xf32>
    %11 = vector.broadcast %10 : vector<1x64xf32> to vector<16x64xf32>
    %12 = arith.addf %9, %11 : vector<16x64xf32>
    %cst_11 = arith.constant 0.000000e+00 : f32
    %13 = vector.broadcast %cst_11 : f32 to vector<16x64xf32>
    %14 = arith.maximumf %12, %13 : vector<16x64xf32>
    %c0_12 = arith.constant 0 : index
    %c0_13 = arith.constant 0 : index
    %15 = vector.load %arg6[%c0_12, %c0_13] : memref<64x256xf32, #tpu.memory_space<vmem>>, vector<64x256xf32>
    %cst_14 = arith.constant dense<0.000000e+00> : vector<16x256xf32>
    %16 = tpu.matmul %14, %15, %cst_14 {dimension_numbers = #tpu.dot_dimension_numbers<[1], [0], [0], [1], [0, 0, 1, 1], [], []>} : vector<16x64xf32>, vector<64x256xf32>, vector<16x256xf32> -> vector<16x256xf32>
    %c0_15 = arith.constant 0 : index
    %c0_16 = arith.constant 0 : index
    %17 = vector.load %arg7[%c0_15, %c0_16] : memref<1x256xf32, #tpu.memory_space<vmem>>, vector<1x256xf32>
    %18 = vector.broadcast %17 : vector<1x256xf32> to vector<16x256xf32>
    %19 = arith.addf %16, %18 : vector<16x256xf32>
    %20 = vector.shape_cast %19 : vector<16x256xf32> to vector<2x8x256xf32>
    %21 = vector.extract_strided_slice %7 {offsets = [0, 0, 0], sizes = [2, 1, 128], strides = [1, 1, 1]} : vector<2x8x256xf32> to vector<2x1x128xf32>
    %22 = vector.shape_cast %21 : vector<2x1x128xf32> to vector<2x128xf32>
    %23 = vector.extract_strided_slice %7 {offsets = [0, 7, 128], sizes = [2, 1, 128], strides = [1, 1, 1]} : vector<2x8x256xf32> to vector<2x1x128xf32>
    %24 = vector.shape_cast %23 : vector<2x1x128xf32> to vector<2x128xf32>
    %25 = vector.extract_strided_slice %20 {offsets = [0, 0, 0], sizes = [2, 1, 128], strides = [1, 1, 1]} : vector<2x8x256xf32> to vector<2x1x128xf32>
    %26 = vector.shape_cast %25 : vector<2x1x128xf32> to vector<2x128xf32>
    %27 = vector.extract_strided_slice %20 {offsets = [0, 7, 128], sizes = [2, 1, 128], strides = [1, 1, 1]} : vector<2x8x256xf32> to vector<2x1x128xf32>
    %28 = vector.shape_cast %27 : vector<2x1x128xf32> to vector<2x128xf32>
    %29 = tpu.concatenate %22, %24, %26, %28 in 0 : vector<2x128xf32>, vector<2x128xf32>, vector<2x128xf32>, vector<2x128xf32> -> vector<8x128xf32>
    %30 = vector.extract_strided_slice %7 {offsets = [0, 1, 0], sizes = [2, 1, 128], strides = [1, 1, 1]} : vector<2x8x256xf32> to vector<2x1x128xf32>
    %31 = vector.shape_cast %30 : vector<2x1x128xf32> to vector<2x128xf32>
    %32 = vector.extract_strided_slice %7 {offsets = [0, 6, 128], sizes = [2, 1, 128], strides = [1, 1, 1]} : vector<2x8x256xf32> to vector<2x1x128xf32>
    %33 = vector.shape_cast %32 : vector<2x1x128xf32> to vector<2x128xf32>
    %34 = vector.extract_strided_slice %20 {offsets = [0, 1, 0], sizes = [2, 1, 128], strides = [1, 1, 1]} : vector<2x8x256xf32> to vector<2x1x128xf32>
    %35 = vector.shape_cast %34 : vector<2x1x128xf32> to vector<2x128xf32>
    %36 = vector.extract_strided_slice %20 {offsets = [0, 6, 128], sizes = [2, 1, 128], strides = [1, 1, 1]} : vector<2x8x256xf32> to vector<2x1x128xf32>
    %37 = vector.shape_cast %36 : vector<2x1x128xf32> to vector<2x128xf32>
    %38 = tpu.concatenate %31, %33, %35, %37 in 0 : vector<2x128xf32>, vector<2x128xf32>, vector<2x128xf32>, vector<2x128xf32> -> vector<8x128xf32>
    %39 = vector.extract_strided_slice %7 {offsets = [0, 2, 0], sizes = [2, 1, 128], strides = [1, 1, 1]} : vector<2x8x256xf32> to vector<2x1x128xf32>
    %40 = vector.shape_cast %39 : vector<2x1x128xf32> to vector<2x128xf32>
    %41 = vector.extract_strided_slice %7 {offsets = [0, 5, 128], sizes = [2, 1, 128], strides = [1, 1, 1]} : vector<2x8x256xf32> to vector<2x1x128xf32>
    %42 = vector.shape_cast %41 : vector<2x1x128xf32> to vector<2x128xf32>
    %43 = vector.extract_strided_slice %20 {offsets = [0, 2, 0], sizes = [2, 1, 128], strides = [1, 1, 1]} : vector<2x8x256xf32> to vector<2x1x128xf32>
    %44 = vector.shape_cast %43 : vector<2x1x128xf32> to vector<2x128xf32>
    %45 = vector.extract_strided_slice %20 {offsets = [0, 5, 128], sizes = [2, 1, 128], strides = [1, 1, 1]} : vector<2x8x256xf32> to vector<2x1x128xf32>
    %46 = vector.shape_cast %45 : vector<2x1x128xf32> to vector<2x128xf32>
    %47 = tpu.concatenate %40, %42, %44, %46 in 0 : vector<2x128xf32>, vector<2x128xf32>, vector<2x128xf32>, vector<2x128xf32> -> vector<8x128xf32>
    %48 = vector.extract_strided_slice %7 {offsets = [0, 3, 0], sizes = [2, 1, 128], strides = [1, 1, 1]} : vector<2x8x256xf32> to vector<2x1x128xf32>
    %49 = vector.shape_cast %48 : vector<2x1x128xf32> to vector<2x128xf32>
    %50 = vector.extract_strided_slice %7 {offsets = [0, 4, 128], sizes = [2, 1, 128], strides = [1, 1, 1]} : vector<2x8x256xf32> to vector<2x1x128xf32>
    %51 = vector.shape_cast %50 : vector<2x1x128xf32> to vector<2x128xf32>
    %52 = vector.extract_strided_slice %20 {offsets = [0, 3, 0], sizes = [2, 1, 128], strides = [1, 1, 1]} : vector<2x8x256xf32> to vector<2x1x128xf32>
    %53 = vector.shape_cast %52 : vector<2x1x128xf32> to vector<2x128xf32>
    %54 = vector.extract_strided_slice %20 {offsets = [0, 4, 128], sizes = [2, 1, 128], strides = [1, 1, 1]} : vector<2x8x256xf32> to vector<2x1x128xf32>
    %55 = vector.shape_cast %54 : vector<2x1x128xf32> to vector<2x128xf32>
    %56 = tpu.concatenate %49, %51, %53, %55 in 0 : vector<2x128xf32>, vector<2x128xf32>, vector<2x128xf32>, vector<2x128xf32> -> vector<8x128xf32>
    %57 = vector.extract_strided_slice %7 {offsets = [0, 4, 0], sizes = [2, 1, 128], strides = [1, 1, 1]} : vector<2x8x256xf32> to vector<2x1x128xf32>
    %58 = vector.shape_cast %57 : vector<2x1x128xf32> to vector<2x128xf32>
    %59 = vector.extract_strided_slice %7 {offsets = [0, 3, 128], sizes = [2, 1, 128], strides = [1, 1, 1]} : vector<2x8x256xf32> to vector<2x1x128xf32>
    %60 = vector.shape_cast %59 : vector<2x1x128xf32> to vector<2x128xf32>
    %61 = vector.extract_strided_slice %20 {offsets = [0, 4, 0], sizes = [2, 1, 128], strides = [1, 1, 1]} : vector<2x8x256xf32> to vector<2x1x128xf32>
    %62 = vector.shape_cast %61 : vector<2x1x128xf32> to vector<2x128xf32>
    %63 = vector.extract_strided_slice %20 {offsets = [0, 3, 128], sizes = [2, 1, 128], strides = [1, 1, 1]} : vector<2x8x256xf32> to vector<2x1x128xf32>
    %64 = vector.shape_cast %63 : vector<2x1x128xf32> to vector<2x128xf32>
    %65 = tpu.concatenate %58, %60, %62, %64 in 0 : vector<2x128xf32>, vector<2x128xf32>, vector<2x128xf32>, vector<2x128xf32> -> vector<8x128xf32>
    %66 = vector.extract_strided_slice %7 {offsets = [0, 5, 0], sizes = [2, 1, 128], strides = [1, 1, 1]} : vector<2x8x256xf32> to vector<2x1x128xf32>
    %67 = vector.shape_cast %66 : vector<2x1x128xf32> to vector<2x128xf32>
    %68 = vector.extract_strided_slice %7 {offsets = [0, 2, 128], sizes = [2, 1, 128], strides = [1, 1, 1]} : vector<2x8x256xf32> to vector<2x1x128xf32>
    %69 = vector.shape_cast %68 : vector<2x1x128xf32> to vector<2x128xf32>
    %70 = vector.extract_strided_slice %20 {offsets = [0, 5, 0], sizes = [2, 1, 128], strides = [1, 1, 1]} : vector<2x8x256xf32> to vector<2x1x128xf32>
    %71 = vector.shape_cast %70 : vector<2x1x128xf32> to vector<2x128xf32>
    %72 = vector.extract_strided_slice %20 {offsets = [0, 2, 128], sizes = [2, 1, 128], strides = [1, 1, 1]} : vector<2x8x256xf32> to vector<2x1x128xf32>
    %73 = vector.shape_cast %72 : vector<2x1x128xf32> to vector<2x128xf32>
    %74 = tpu.concatenate %67, %69, %71, %73 in 0 : vector<2x128xf32>, vector<2x128xf32>, vector<2x128xf32>, vector<2x128xf32> -> vector<8x128xf32>
    %75 = vector.extract_strided_slice %7 {offsets = [0, 6, 0], sizes = [2, 1, 128], strides = [1, 1, 1]} : vector<2x8x256xf32> to vector<2x1x128xf32>
    %76 = vector.shape_cast %75 : vector<2x1x128xf32> to vector<2x128xf32>
    %77 = vector.extract_strided_slice %7 {offsets = [0, 1, 128], sizes = [2, 1, 128], strides = [1, 1, 1]} : vector<2x8x256xf32> to vector<2x1x128xf32>
    %78 = vector.shape_cast %77 : vector<2x1x128xf32> to vector<2x128xf32>
    %79 = vector.extract_strided_slice %20 {offsets = [0, 6, 0], sizes = [2, 1, 128], strides = [1, 1, 1]} : vector<2x8x256xf32> to vector<2x1x128xf32>
    %80 = vector.shape_cast %79 : vector<2x1x128xf32> to vector<2x128xf32>
    %81 = vector.extract_strided_slice %20 {offsets = [0, 1, 128], sizes = [2, 1, 128], strides = [1, 1, 1]} : vector<2x8x256xf32> to vector<2x1x128xf32>
    %82 = vector.shape_cast %81 : vector<2x1x128xf32> to vector<2x128xf32>
    %83 = tpu.concatenate %76, %78, %80, %82 in 0 : vector<2x128xf32>, vector<2x128xf32>, vector<2x128xf32>, vector<2x128xf32> -> vector<8x128xf32>
    %84 = vector.extract_strided_slice %7 {offsets = [0, 7, 0], sizes = [2, 1, 128], strides = [1, 1, 1]} : vector<2x8x256xf32> to vector<2x1x128xf32>
    %85 = vector.shape_cast %84 : vector<2x1x128xf32> to vector<2x128xf32>
    %86 = vector.extract_strided_slice %7 {offsets = [0, 0, 128], sizes = [2, 1, 128], strides = [1, 1, 1]} : vector<2x8x256xf32> to vector<2x1x128xf32>
    %87 = vector.shape_cast %86 : vector<2x1x128xf32> to vector<2x128xf32>
    %88 = vector.extract_strided_slice %20 {offsets = [0, 7, 0], sizes = [2, 1, 128], strides = [1, 1, 1]} : vector<2x8x256xf32> to vector<2x1x128xf32>
    %89 = vector.shape_cast %88 : vector<2x1x128xf32> to vector<2x128xf32>
    %90 = vector.extract_strided_slice %20 {offsets = [0, 0, 128], sizes = [2, 1, 128], strides = [1, 1, 1]} : vector<2x8x256xf32> to vector<2x1x128xf32>
    %91 = vector.shape_cast %90 : vector<2x1x128xf32> to vector<2x128xf32>
    %92 = tpu.concatenate %85, %87, %89, %91 in 0 : vector<2x128xf32>, vector<2x128xf32>, vector<2x128xf32>, vector<2x128xf32> -> vector<8x128xf32>
    %93 = tpu.iota {dimensions = array<i32: 0>} : vector<8x128xi32>
    %94 = tpu.iota {dimensions = array<i32: 1>} : vector<8x128xi32>
    %c0_i32 = arith.constant 0 : i32
    %95 = vector.broadcast %c0_i32 : i32 to vector<8x128xi32>
    %96 = arith.cmpi sge, %93, %95 : vector<8x128xi32>
    %c2_i32 = arith.constant 2 : i32
    %97 = vector.broadcast %c2_i32 : i32 to vector<8x128xi32>
    %98 = arith.cmpi slt, %93, %97 : vector<8x128xi32>
    %99 = arith.andi %96, %98 : vector<8x128xi1>
    %c0_i32_17 = arith.constant 0 : i32
    %100 = vector.broadcast %c0_i32_17 : i32 to vector<8x128xi32>
    %101 = arith.cmpi sge, %94, %100 : vector<8x128xi32>
    %102 = arith.andi %99, %101 : vector<8x128xi1>
    %c32_i32 = arith.constant 32 : i32
    %103 = vector.broadcast %c32_i32 : i32 to vector<8x128xi32>
    %104 = arith.cmpi slt, %94, %103 : vector<8x128xi32>
    %105 = arith.andi %102, %104 : vector<8x128xi1>
    %c2_i32_18 = arith.constant 2 : i32
    %106 = vector.broadcast %c2_i32_18 : i32 to vector<8x128xi32>
    %107 = arith.cmpi sge, %93, %106 : vector<8x128xi32>
    %c4_i32 = arith.constant 4 : i32
    %108 = vector.broadcast %c4_i32 : i32 to vector<8x128xi32>
    %109 = arith.cmpi slt, %93, %108 : vector<8x128xi32>
    %110 = arith.andi %107, %109 : vector<8x128xi1>
    %c32_i32_19 = arith.constant 32 : i32
    %111 = vector.broadcast %c32_i32_19 : i32 to vector<8x128xi32>
    %112 = arith.cmpi sge, %94, %111 : vector<8x128xi32>
    %113 = arith.andi %110, %112 : vector<8x128xi1>
    %c64_i32 = arith.constant 64 : i32
    %114 = vector.broadcast %c64_i32 : i32 to vector<8x128xi32>
    %115 = arith.cmpi slt, %94, %114 : vector<8x128xi32>
    %116 = arith.andi %113, %115 : vector<8x128xi1>
    %117 = arith.ori %105, %116 : vector<8x128xi1>
    %c4_i32_20 = arith.constant 4 : i32
    %118 = vector.broadcast %c4_i32_20 : i32 to vector<8x128xi32>
    %119 = arith.cmpi sge, %93, %118 : vector<8x128xi32>
    %c6_i32 = arith.constant 6 : i32
    %120 = vector.broadcast %c6_i32 : i32 to vector<8x128xi32>
    %121 = arith.cmpi slt, %93, %120 : vector<8x128xi32>
    %122 = arith.andi %119, %121 : vector<8x128xi1>
    %c64_i32_21 = arith.constant 64 : i32
    %123 = vector.broadcast %c64_i32_21 : i32 to vector<8x128xi32>
    %124 = arith.cmpi sge, %94, %123 : vector<8x128xi32>
    %125 = arith.andi %122, %124 : vector<8x128xi1>
    %c96_i32 = arith.constant 96 : i32
    %126 = vector.broadcast %c96_i32 : i32 to vector<8x128xi32>
    %127 = arith.cmpi slt, %94, %126 : vector<8x128xi32>
    %128 = arith.andi %125, %127 : vector<8x128xi1>
    %129 = arith.ori %117, %128 : vector<8x128xi1>
    %c6_i32_22 = arith.constant 6 : i32
    %130 = vector.broadcast %c6_i32_22 : i32 to vector<8x128xi32>
    %131 = arith.cmpi sge, %93, %130 : vector<8x128xi32>
    %c8_i32 = arith.constant 8 : i32
    %132 = vector.broadcast %c8_i32 : i32 to vector<8x128xi32>
    %133 = arith.cmpi slt, %93, %132 : vector<8x128xi32>
    %134 = arith.andi %131, %133 : vector<8x128xi1>
    %c96_i32_23 = arith.constant 96 : i32
    %135 = vector.broadcast %c96_i32_23 : i32 to vector<8x128xi32>
    %136 = arith.cmpi sge, %94, %135 : vector<8x128xi32>
    %137 = arith.andi %134, %136 : vector<8x128xi1>
    %c128_i32 = arith.constant 128 : i32
    %138 = vector.broadcast %c128_i32 : i32 to vector<8x128xi32>
    %139 = arith.cmpi slt, %94, %138 : vector<8x128xi32>
    %140 = arith.andi %137, %139 : vector<8x128xi1>
    %141 = arith.ori %129, %140 : vector<8x128xi1>
    %142 = arith.extui %141 : vector<8x128xi1> to vector<8x128xi32>
    %143 = arith.sitofp %142 : vector<8x128xi32> to vector<8x128xf32>
    %c0_24 = arith.constant 0 : index
    %c0_25 = arith.constant 0 : index
    %144 = vector.load %arg8[%c0_24, %c0_25] : memref<128x128xf32, #tpu.memory_space<vmem>>, vector<128x128xf32>
    %145 = arith.truncf %144 : vector<128x128xf32> to vector<128x128xbf16>
    %cst_26 = arith.constant 0.000000e+00 : f32
    %146 = vector.broadcast %cst_26 : f32 to vector<8x32xf32>
    %147 = arith.negf %29 : vector<8x128xf32>
    %148 = math.exp %147 : vector<8x128xf32>
    %cst_27 = arith.constant 1.000000e+00 : f32
    %149 = vector.broadcast %cst_27 : f32 to vector<8x128xf32>
    %150 = arith.addf %149, %148 : vector<8x128xf32>
    %151 = arith.divf %149, %150 : vector<8x128xf32>
    %152 = vector.extract_strided_slice %151 {offsets = [0, 0], sizes = [8, 32], strides = [1, 1]} : vector<8x128xf32> to vector<8x32xf32>
    %153 = vector.extract_strided_slice %151 {offsets = [0, 32], sizes = [8, 32], strides = [1, 1]} : vector<8x128xf32> to vector<8x32xf32>
    %154 = vector.extract_strided_slice %151 {offsets = [0, 64], sizes = [8, 32], strides = [1, 1]} : vector<8x128xf32> to vector<8x32xf32>
    %cst_28 = arith.constant 2.000000e+00 : f32
    %155 = vector.broadcast %cst_28 : f32 to vector<8x32xf32>
    %156 = arith.mulf %155, %154 : vector<8x32xf32>
    %cst_29 = arith.constant 1.000000e+00 : f32
    %157 = vector.broadcast %cst_29 : f32 to vector<8x32xf32>
    %158 = arith.subf %156, %157 : vector<8x32xf32>
    %159 = vector.extract_strided_slice %151 {offsets = [0, 96], sizes = [8, 32], strides = [1, 1]} : vector<8x128xf32> to vector<8x32xf32>
    %160 = arith.mulf %153, %146 : vector<8x32xf32>
    %161 = arith.mulf %152, %158 : vector<8x32xf32>
    %162 = arith.addf %160, %161 : vector<8x32xf32>
    %163 = math.tanh %162 : vector<8x32xf32>
    %164 = arith.mulf %159, %163 : vector<8x32xf32>
    %165 = tpu.concatenate %164, %164, %164, %164 in 1 : vector<8x32xf32>, vector<8x32xf32>, vector<8x32xf32>, vector<8x32xf32> -> vector<8x128xf32>
    %166 = arith.mulf %165, %143 : vector<8x128xf32>
    %167 = arith.truncf %166 : vector<8x128xf32> to vector<8x128xbf16>
    %cst_30 = arith.constant dense<0.000000e+00> : vector<8x128xf32>
    %168 = tpu.matmul %167, %145, %cst_30 {dimension_numbers = #tpu.dot_dimension_numbers<[1], [0], [0], [1], [0, 0, 1, 1], [], []>} : vector<8x128xbf16>, vector<128x128xbf16>, vector<8x128xf32> -> vector<8x128xf32>
    %169 = arith.addf %38, %168 : vector<8x128xf32>
    %170 = arith.negf %169 : vector<8x128xf32>
    %171 = math.exp %170 : vector<8x128xf32>
    %cst_31 = arith.constant 1.000000e+00 : f32
    %172 = vector.broadcast %cst_31 : f32 to vector<8x128xf32>
    %173 = arith.addf %172, %171 : vector<8x128xf32>
    %174 = arith.divf %172, %173 : vector<8x128xf32>
    %175 = vector.extract_strided_slice %174 {offsets = [0, 0], sizes = [8, 32], strides = [1, 1]} : vector<8x128xf32> to vector<8x32xf32>
    %176 = vector.extract_strided_slice %174 {offsets = [0, 32], sizes = [8, 32], strides = [1, 1]} : vector<8x128xf32> to vector<8x32xf32>
    %177 = vector.extract_strided_slice %174 {offsets = [0, 64], sizes = [8, 32], strides = [1, 1]} : vector<8x128xf32> to vector<8x32xf32>
    %cst_32 = arith.constant 2.000000e+00 : f32
    %178 = vector.broadcast %cst_32 : f32 to vector<8x32xf32>
    %179 = arith.mulf %178, %177 : vector<8x32xf32>
    %cst_33 = arith.constant 1.000000e+00 : f32
    %180 = vector.broadcast %cst_33 : f32 to vector<8x32xf32>
    %181 = arith.subf %179, %180 : vector<8x32xf32>
    %182 = vector.extract_strided_slice %174 {offsets = [0, 96], sizes = [8, 32], strides = [1, 1]} : vector<8x128xf32> to vector<8x32xf32>
    %183 = arith.mulf %176, %162 : vector<8x32xf32>
    %184 = arith.mulf %175, %181 : vector<8x32xf32>
    %185 = arith.addf %183, %184 : vector<8x32xf32>
    %186 = math.tanh %185 : vector<8x32xf32>
    %187 = arith.mulf %182, %186 : vector<8x32xf32>
    %188 = tpu.concatenate %187, %187, %187, %187 in 1 : vector<8x32xf32>, vector<8x32xf32>, vector<8x32xf32>, vector<8x32xf32> -> vector<8x128xf32>
    %189 = arith.mulf %188, %143 : vector<8x128xf32>
    %190 = arith.truncf %189 : vector<8x128xf32> to vector<8x128xbf16>
    %cst_34 = arith.constant dense<0.000000e+00> : vector<8x128xf32>
    %191 = tpu.matmul %190, %145, %cst_34 {dimension_numbers = #tpu.dot_dimension_numbers<[1], [0], [0], [1], [0, 0, 1, 1], [], []>} : vector<8x128xbf16>, vector<128x128xbf16>, vector<8x128xf32> -> vector<8x128xf32>
    %192 = arith.addf %47, %191 : vector<8x128xf32>
    %193 = arith.negf %192 : vector<8x128xf32>
    %194 = math.exp %193 : vector<8x128xf32>
    %cst_35 = arith.constant 1.000000e+00 : f32
    %195 = vector.broadcast %cst_35 : f32 to vector<8x128xf32>
    %196 = arith.addf %195, %194 : vector<8x128xf32>
    %197 = arith.divf %195, %196 : vector<8x128xf32>
    %198 = vector.extract_strided_slice %197 {offsets = [0, 0], sizes = [8, 32], strides = [1, 1]} : vector<8x128xf32> to vector<8x32xf32>
    %199 = vector.extract_strided_slice %197 {offsets = [0, 32], sizes = [8, 32], strides = [1, 1]} : vector<8x128xf32> to vector<8x32xf32>
    %200 = vector.extract_strided_slice %197 {offsets = [0, 64], sizes = [8, 32], strides = [1, 1]} : vector<8x128xf32> to vector<8x32xf32>
    %cst_36 = arith.constant 2.000000e+00 : f32
    %201 = vector.broadcast %cst_36 : f32 to vector<8x32xf32>
    %202 = arith.mulf %201, %200 : vector<8x32xf32>
    %cst_37 = arith.constant 1.000000e+00 : f32
    %203 = vector.broadcast %cst_37 : f32 to vector<8x32xf32>
    %204 = arith.subf %202, %203 : vector<8x32xf32>
    %205 = vector.extract_strided_slice %197 {offsets = [0, 96], sizes = [8, 32], strides = [1, 1]} : vector<8x128xf32> to vector<8x32xf32>
    %206 = arith.mulf %199, %185 : vector<8x32xf32>
    %207 = arith.mulf %198, %204 : vector<8x32xf32>
    %208 = arith.addf %206, %207 : vector<8x32xf32>
    %209 = math.tanh %208 : vector<8x32xf32>
    %210 = arith.mulf %205, %209 : vector<8x32xf32>
    %211 = tpu.concatenate %210, %210, %210, %210 in 1 : vector<8x32xf32>, vector<8x32xf32>, vector<8x32xf32>, vector<8x32xf32> -> vector<8x128xf32>
    %212 = arith.mulf %211, %143 : vector<8x128xf32>
    %213 = arith.truncf %212 : vector<8x128xf32> to vector<8x128xbf16>
    %cst_38 = arith.constant dense<0.000000e+00> : vector<8x128xf32>
    %214 = tpu.matmul %213, %145, %cst_38 {dimension_numbers = #tpu.dot_dimension_numbers<[1], [0], [0], [1], [0, 0, 1, 1], [], []>} : vector<8x128xbf16>, vector<128x128xbf16>, vector<8x128xf32> -> vector<8x128xf32>
    %215 = arith.addf %56, %214 : vector<8x128xf32>
    %216 = arith.negf %215 : vector<8x128xf32>
    %217 = math.exp %216 : vector<8x128xf32>
    %cst_39 = arith.constant 1.000000e+00 : f32
    %218 = vector.broadcast %cst_39 : f32 to vector<8x128xf32>
    %219 = arith.addf %218, %217 : vector<8x128xf32>
    %220 = arith.divf %218, %219 : vector<8x128xf32>
    %221 = vector.extract_strided_slice %220 {offsets = [0, 0], sizes = [8, 32], strides = [1, 1]} : vector<8x128xf32> to vector<8x32xf32>
    %222 = vector.extract_strided_slice %220 {offsets = [0, 32], sizes = [8, 32], strides = [1, 1]} : vector<8x128xf32> to vector<8x32xf32>
    %223 = vector.extract_strided_slice %220 {offsets = [0, 64], sizes = [8, 32], strides = [1, 1]} : vector<8x128xf32> to vector<8x32xf32>
    %cst_40 = arith.constant 2.000000e+00 : f32
    %224 = vector.broadcast %cst_40 : f32 to vector<8x32xf32>
    %225 = arith.mulf %224, %223 : vector<8x32xf32>
    %cst_41 = arith.constant 1.000000e+00 : f32
    %226 = vector.broadcast %cst_41 : f32 to vector<8x32xf32>
    %227 = arith.subf %225, %226 : vector<8x32xf32>
    %228 = vector.extract_strided_slice %220 {offsets = [0, 96], sizes = [8, 32], strides = [1, 1]} : vector<8x128xf32> to vector<8x32xf32>
    %229 = arith.mulf %222, %208 : vector<8x32xf32>
    %230 = arith.mulf %221, %227 : vector<8x32xf32>
    %231 = arith.addf %229, %230 : vector<8x32xf32>
    %232 = math.tanh %231 : vector<8x32xf32>
    %233 = arith.mulf %228, %232 : vector<8x32xf32>
    %234 = tpu.concatenate %233, %233, %233, %233 in 1 : vector<8x32xf32>, vector<8x32xf32>, vector<8x32xf32>, vector<8x32xf32> -> vector<8x128xf32>
    %235 = arith.mulf %234, %143 : vector<8x128xf32>
    %236 = arith.truncf %235 : vector<8x128xf32> to vector<8x128xbf16>
    %cst_42 = arith.constant dense<0.000000e+00> : vector<8x128xf32>
    %237 = tpu.matmul %236, %145, %cst_42 {dimension_numbers = #tpu.dot_dimension_numbers<[1], [0], [0], [1], [0, 0, 1, 1], [], []>} : vector<8x128xbf16>, vector<128x128xbf16>, vector<8x128xf32> -> vector<8x128xf32>
    %238 = arith.addf %65, %237 : vector<8x128xf32>
    %239 = arith.negf %238 : vector<8x128xf32>
    %240 = math.exp %239 : vector<8x128xf32>
    %cst_43 = arith.constant 1.000000e+00 : f32
    %241 = vector.broadcast %cst_43 : f32 to vector<8x128xf32>
    %242 = arith.addf %241, %240 : vector<8x128xf32>
    %243 = arith.divf %241, %242 : vector<8x128xf32>
    %244 = vector.extract_strided_slice %243 {offsets = [0, 0], sizes = [8, 32], strides = [1, 1]} : vector<8x128xf32> to vector<8x32xf32>
    %245 = vector.extract_strided_slice %243 {offsets = [0, 32], sizes = [8, 32], strides = [1, 1]} : vector<8x128xf32> to vector<8x32xf32>
    %246 = vector.extract_strided_slice %243 {offsets = [0, 64], sizes = [8, 32], strides = [1, 1]} : vector<8x128xf32> to vector<8x32xf32>
    %cst_44 = arith.constant 2.000000e+00 : f32
    %247 = vector.broadcast %cst_44 : f32 to vector<8x32xf32>
    %248 = arith.mulf %247, %246 : vector<8x32xf32>
    %cst_45 = arith.constant 1.000000e+00 : f32
    %249 = vector.broadcast %cst_45 : f32 to vector<8x32xf32>
    %250 = arith.subf %248, %249 : vector<8x32xf32>
    %251 = vector.extract_strided_slice %243 {offsets = [0, 96], sizes = [8, 32], strides = [1, 1]} : vector<8x128xf32> to vector<8x32xf32>
    %252 = arith.mulf %245, %231 : vector<8x32xf32>
    %253 = arith.mulf %244, %250 : vector<8x32xf32>
    %254 = arith.addf %252, %253 : vector<8x32xf32>
    %255 = math.tanh %254 : vector<8x32xf32>
    %256 = arith.mulf %251, %255 : vector<8x32xf32>
    %257 = tpu.concatenate %256, %256, %256, %256 in 1 : vector<8x32xf32>, vector<8x32xf32>, vector<8x32xf32>, vector<8x32xf32> -> vector<8x128xf32>
    %258 = arith.mulf %257, %143 : vector<8x128xf32>
    %259 = arith.truncf %258 : vector<8x128xf32> to vector<8x128xbf16>
    %cst_46 = arith.constant dense<0.000000e+00> : vector<8x128xf32>
    %260 = tpu.matmul %259, %145, %cst_46 {dimension_numbers = #tpu.dot_dimension_numbers<[1], [0], [0], [1], [0, 0, 1, 1], [], []>} : vector<8x128xbf16>, vector<128x128xbf16>, vector<8x128xf32> -> vector<8x128xf32>
    %261 = arith.addf %74, %260 : vector<8x128xf32>
    %262 = arith.negf %261 : vector<8x128xf32>
    %263 = math.exp %262 : vector<8x128xf32>
    %cst_47 = arith.constant 1.000000e+00 : f32
    %264 = vector.broadcast %cst_47 : f32 to vector<8x128xf32>
    %265 = arith.addf %264, %263 : vector<8x128xf32>
    %266 = arith.divf %264, %265 : vector<8x128xf32>
    %267 = vector.extract_strided_slice %266 {offsets = [0, 0], sizes = [8, 32], strides = [1, 1]} : vector<8x128xf32> to vector<8x32xf32>
    %268 = vector.extract_strided_slice %266 {offsets = [0, 32], sizes = [8, 32], strides = [1, 1]} : vector<8x128xf32> to vector<8x32xf32>
    %269 = vector.extract_strided_slice %266 {offsets = [0, 64], sizes = [8, 32], strides = [1, 1]} : vector<8x128xf32> to vector<8x32xf32>
    %cst_48 = arith.constant 2.000000e+00 : f32
    %270 = vector.broadcast %cst_48 : f32 to vector<8x32xf32>
    %271 = arith.mulf %270, %269 : vector<8x32xf32>
    %cst_49 = arith.constant 1.000000e+00 : f32
    %272 = vector.broadcast %cst_49 : f32 to vector<8x32xf32>
    %273 = arith.subf %271, %272 : vector<8x32xf32>
    %274 = vector.extract_strided_slice %266 {offsets = [0, 96], sizes = [8, 32], strides = [1, 1]} : vector<8x128xf32> to vector<8x32xf32>
    %275 = arith.mulf %268, %254 : vector<8x32xf32>
    %276 = arith.mulf %267, %273 : vector<8x32xf32>
    %277 = arith.addf %275, %276 : vector<8x32xf32>
    %278 = math.tanh %277 : vector<8x32xf32>
    %279 = arith.mulf %274, %278 : vector<8x32xf32>
    %280 = tpu.concatenate %279, %279, %279, %279 in 1 : vector<8x32xf32>, vector<8x32xf32>, vector<8x32xf32>, vector<8x32xf32> -> vector<8x128xf32>
    %281 = arith.mulf %280, %143 : vector<8x128xf32>
    %282 = arith.truncf %281 : vector<8x128xf32> to vector<8x128xbf16>
    %cst_50 = arith.constant dense<0.000000e+00> : vector<8x128xf32>
    %283 = tpu.matmul %282, %145, %cst_50 {dimension_numbers = #tpu.dot_dimension_numbers<[1], [0], [0], [1], [0, 0, 1, 1], [], []>} : vector<8x128xbf16>, vector<128x128xbf16>, vector<8x128xf32> -> vector<8x128xf32>
    %284 = arith.addf %83, %283 : vector<8x128xf32>
    %285 = arith.negf %284 : vector<8x128xf32>
    %286 = math.exp %285 : vector<8x128xf32>
    %cst_51 = arith.constant 1.000000e+00 : f32
    %287 = vector.broadcast %cst_51 : f32 to vector<8x128xf32>
    %288 = arith.addf %287, %286 : vector<8x128xf32>
    %289 = arith.divf %287, %288 : vector<8x128xf32>
    %290 = vector.extract_strided_slice %289 {offsets = [0, 0], sizes = [8, 32], strides = [1, 1]} : vector<8x128xf32> to vector<8x32xf32>
    %291 = vector.extract_strided_slice %289 {offsets = [0, 32], sizes = [8, 32], strides = [1, 1]} : vector<8x128xf32> to vector<8x32xf32>
    %292 = vector.extract_strided_slice %289 {offsets = [0, 64], sizes = [8, 32], strides = [1, 1]} : vector<8x128xf32> to vector<8x32xf32>
    %cst_52 = arith.constant 2.000000e+00 : f32
    %293 = vector.broadcast %cst_52 : f32 to vector<8x32xf32>
    %294 = arith.mulf %293, %292 : vector<8x32xf32>
    %cst_53 = arith.constant 1.000000e+00 : f32
    %295 = vector.broadcast %cst_53 : f32 to vector<8x32xf32>
    %296 = arith.subf %294, %295 : vector<8x32xf32>
    %297 = vector.extract_strided_slice %289 {offsets = [0, 96], sizes = [8, 32], strides = [1, 1]} : vector<8x128xf32> to vector<8x32xf32>
    %298 = arith.mulf %291, %277 : vector<8x32xf32>
    %299 = arith.mulf %290, %296 : vector<8x32xf32>
    %300 = arith.addf %298, %299 : vector<8x32xf32>
    %301 = math.tanh %300 : vector<8x32xf32>
    %302 = arith.mulf %297, %301 : vector<8x32xf32>
    %303 = tpu.concatenate %302, %302, %302, %302 in 1 : vector<8x32xf32>, vector<8x32xf32>, vector<8x32xf32>, vector<8x32xf32> -> vector<8x128xf32>
    %304 = arith.mulf %303, %143 : vector<8x128xf32>
    %305 = arith.truncf %304 : vector<8x128xf32> to vector<8x128xbf16>
    %cst_54 = arith.constant dense<0.000000e+00> : vector<8x128xf32>
    %306 = tpu.matmul %305, %145, %cst_54 {dimension_numbers = #tpu.dot_dimension_numbers<[1], [0], [0], [1], [0, 0, 1, 1], [], []>} : vector<8x128xbf16>, vector<128x128xbf16>, vector<8x128xf32> -> vector<8x128xf32>
    %307 = arith.addf %92, %306 : vector<8x128xf32>
    %308 = arith.negf %307 : vector<8x128xf32>
    %309 = math.exp %308 : vector<8x128xf32>
    %cst_55 = arith.constant 1.000000e+00 : f32
    %310 = vector.broadcast %cst_55 : f32 to vector<8x128xf32>
    %311 = arith.addf %310, %309 : vector<8x128xf32>
    %312 = arith.divf %310, %311 : vector<8x128xf32>
    %313 = vector.extract_strided_slice %312 {offsets = [0, 0], sizes = [8, 32], strides = [1, 1]} : vector<8x128xf32> to vector<8x32xf32>
    %314 = vector.extract_strided_slice %312 {offsets = [0, 32], sizes = [8, 32], strides = [1, 1]} : vector<8x128xf32> to vector<8x32xf32>
    %315 = vector.extract_strided_slice %312 {offsets = [0, 64], sizes = [8, 32], strides = [1, 1]} : vector<8x128xf32> to vector<8x32xf32>
    %cst_56 = arith.constant 2.000000e+00 : f32
    %316 = vector.broadcast %cst_56 : f32 to vector<8x32xf32>
    %317 = arith.mulf %316, %315 : vector<8x32xf32>
    %cst_57 = arith.constant 1.000000e+00 : f32
    %318 = vector.broadcast %cst_57 : f32 to vector<8x32xf32>
    %319 = arith.subf %317, %318 : vector<8x32xf32>
    %320 = vector.extract_strided_slice %312 {offsets = [0, 96], sizes = [8, 32], strides = [1, 1]} : vector<8x128xf32> to vector<8x32xf32>
    %321 = arith.mulf %314, %300 : vector<8x32xf32>
    %322 = arith.mulf %313, %319 : vector<8x32xf32>
    %323 = arith.addf %321, %322 : vector<8x32xf32>
    %324 = math.tanh %323 : vector<8x32xf32>
    %325 = arith.mulf %320, %324 : vector<8x32xf32>
    %326 = vector.extract_strided_slice %164 {offsets = [0, 0], sizes = [2, 32], strides = [1, 1]} : vector<8x32xf32> to vector<2x32xf32>
    %327 = vector.extract_strided_slice %325 {offsets = [2, 0], sizes = [2, 32], strides = [1, 1]} : vector<8x32xf32> to vector<2x32xf32>
    %328 = tpu.concatenate %326, %327 in 1 : vector<2x32xf32>, vector<2x32xf32> -> vector<2x64xf32>
    %329 = vector.extract_strided_slice %164 {offsets = [4, 0], sizes = [2, 32], strides = [1, 1]} : vector<8x32xf32> to vector<2x32xf32>
    %330 = vector.extract_strided_slice %325 {offsets = [6, 0], sizes = [2, 32], strides = [1, 1]} : vector<8x32xf32> to vector<2x32xf32>
    %331 = tpu.concatenate %329, %330 in 1 : vector<2x32xf32>, vector<2x32xf32> -> vector<2x64xf32>
    %332 = vector.extract_strided_slice %187 {offsets = [0, 0], sizes = [2, 32], strides = [1, 1]} : vector<8x32xf32> to vector<2x32xf32>
    %333 = vector.extract_strided_slice %302 {offsets = [2, 0], sizes = [2, 32], strides = [1, 1]} : vector<8x32xf32> to vector<2x32xf32>
    %334 = tpu.concatenate %332, %333 in 1 : vector<2x32xf32>, vector<2x32xf32> -> vector<2x64xf32>
    %335 = vector.extract_strided_slice %187 {offsets = [4, 0], sizes = [2, 32], strides = [1, 1]} : vector<8x32xf32> to vector<2x32xf32>
    %336 = vector.extract_strided_slice %302 {offsets = [6, 0], sizes = [2, 32], strides = [1, 1]} : vector<8x32xf32> to vector<2x32xf32>
    %337 = tpu.concatenate %335, %336 in 1 : vector<2x32xf32>, vector<2x32xf32> -> vector<2x64xf32>
    %338 = vector.extract_strided_slice %210 {offsets = [0, 0], sizes = [2, 32], strides = [1, 1]} : vector<8x32xf32> to vector<2x32xf32>
    %339 = vector.extract_strided_slice %279 {offsets = [2, 0], sizes = [2, 32], strides = [1, 1]} : vector<8x32xf32> to vector<2x32xf32>
    %340 = tpu.concatenate %338, %339 in 1 : vector<2x32xf32>, vector<2x32xf32> -> vector<2x64xf32>
    %341 = vector.extract_strided_slice %210 {offsets = [4, 0], sizes = [2, 32], strides = [1, 1]} : vector<8x32xf32> to vector<2x32xf32>
    %342 = vector.extract_strided_slice %279 {offsets = [6, 0], sizes = [2, 32], strides = [1, 1]} : vector<8x32xf32> to vector<2x32xf32>
    %343 = tpu.concatenate %341, %342 in 1 : vector<2x32xf32>, vector<2x32xf32> -> vector<2x64xf32>
    %344 = vector.extract_strided_slice %233 {offsets = [0, 0], sizes = [2, 32], strides = [1, 1]} : vector<8x32xf32> to vector<2x32xf32>
    %345 = vector.extract_strided_slice %256 {offsets = [2, 0], sizes = [2, 32], strides = [1, 1]} : vector<8x32xf32> to vector<2x32xf32>
    %346 = tpu.concatenate %344, %345 in 1 : vector<2x32xf32>, vector<2x32xf32> -> vector<2x64xf32>
    %347 = vector.extract_strided_slice %233 {offsets = [4, 0], sizes = [2, 32], strides = [1, 1]} : vector<8x32xf32> to vector<2x32xf32>
    %348 = vector.extract_strided_slice %256 {offsets = [6, 0], sizes = [2, 32], strides = [1, 1]} : vector<8x32xf32> to vector<2x32xf32>
    %349 = tpu.concatenate %347, %348 in 1 : vector<2x32xf32>, vector<2x32xf32> -> vector<2x64xf32>
    %350 = vector.extract_strided_slice %256 {offsets = [0, 0], sizes = [2, 32], strides = [1, 1]} : vector<8x32xf32> to vector<2x32xf32>
    %351 = vector.extract_strided_slice %233 {offsets = [2, 0], sizes = [2, 32], strides = [1, 1]} : vector<8x32xf32> to vector<2x32xf32>
    %352 = tpu.concatenate %350, %351 in 1 : vector<2x32xf32>, vector<2x32xf32> -> vector<2x64xf32>
    %353 = vector.extract_strided_slice %256 {offsets = [4, 0], sizes = [2, 32], strides = [1, 1]} : vector<8x32xf32> to vector<2x32xf32>
    %354 = vector.extract_strided_slice %233 {offsets = [6, 0], sizes = [2, 32], strides = [1, 1]} : vector<8x32xf32> to vector<2x32xf32>
    %355 = tpu.concatenate %353, %354 in 1 : vector<2x32xf32>, vector<2x32xf32> -> vector<2x64xf32>
    %356 = vector.extract_strided_slice %279 {offsets = [0, 0], sizes = [2, 32], strides = [1, 1]} : vector<8x32xf32> to vector<2x32xf32>
    %357 = vector.extract_strided_slice %210 {offsets = [2, 0], sizes = [2, 32], strides = [1, 1]} : vector<8x32xf32> to vector<2x32xf32>
    %358 = tpu.concatenate %356, %357 in 1 : vector<2x32xf32>, vector<2x32xf32> -> vector<2x64xf32>
    %359 = vector.extract_strided_slice %279 {offsets = [4, 0], sizes = [2, 32], strides = [1, 1]} : vector<8x32xf32> to vector<2x32xf32>
    %360 = vector.extract_strided_slice %210 {offsets = [6, 0], sizes = [2, 32], strides = [1, 1]} : vector<8x32xf32> to vector<2x32xf32>
    %361 = tpu.concatenate %359, %360 in 1 : vector<2x32xf32>, vector<2x32xf32> -> vector<2x64xf32>
    %362 = vector.extract_strided_slice %302 {offsets = [0, 0], sizes = [2, 32], strides = [1, 1]} : vector<8x32xf32> to vector<2x32xf32>
    %363 = vector.extract_strided_slice %187 {offsets = [2, 0], sizes = [2, 32], strides = [1, 1]} : vector<8x32xf32> to vector<2x32xf32>
    %364 = tpu.concatenate %362, %363 in 1 : vector<2x32xf32>, vector<2x32xf32> -> vector<2x64xf32>
    %365 = vector.extract_strided_slice %302 {offsets = [4, 0], sizes = [2, 32], strides = [1, 1]} : vector<8x32xf32> to vector<2x32xf32>
    %366 = vector.extract_strided_slice %187 {offsets = [6, 0], sizes = [2, 32], strides = [1, 1]} : vector<8x32xf32> to vector<2x32xf32>
    %367 = tpu.concatenate %365, %366 in 1 : vector<2x32xf32>, vector<2x32xf32> -> vector<2x64xf32>
    %368 = vector.extract_strided_slice %325 {offsets = [0, 0], sizes = [2, 32], strides = [1, 1]} : vector<8x32xf32> to vector<2x32xf32>
    %369 = vector.extract_strided_slice %164 {offsets = [2, 0], sizes = [2, 32], strides = [1, 1]} : vector<8x32xf32> to vector<2x32xf32>
    %370 = tpu.concatenate %368, %369 in 1 : vector<2x32xf32>, vector<2x32xf32> -> vector<2x64xf32>
    %371 = vector.extract_strided_slice %325 {offsets = [4, 0], sizes = [2, 32], strides = [1, 1]} : vector<8x32xf32> to vector<2x32xf32>
    %372 = vector.extract_strided_slice %164 {offsets = [6, 0], sizes = [2, 32], strides = [1, 1]} : vector<8x32xf32> to vector<2x32xf32>
    %373 = tpu.concatenate %371, %372 in 1 : vector<2x32xf32>, vector<2x32xf32> -> vector<2x64xf32>
    %374 = vector.shape_cast %328 : vector<2x64xf32> to vector<2x1x64xf32>
    %375 = vector.shape_cast %334 : vector<2x64xf32> to vector<2x1x64xf32>
    %376 = vector.shape_cast %340 : vector<2x64xf32> to vector<2x1x64xf32>
    %377 = vector.shape_cast %346 : vector<2x64xf32> to vector<2x1x64xf32>
    %378 = vector.shape_cast %352 : vector<2x64xf32> to vector<2x1x64xf32>
    %379 = vector.shape_cast %358 : vector<2x64xf32> to vector<2x1x64xf32>
    %380 = vector.shape_cast %364 : vector<2x64xf32> to vector<2x1x64xf32>
    %381 = vector.shape_cast %370 : vector<2x64xf32> to vector<2x1x64xf32>
    %382 = tpu.concatenate %374, %375, %376, %377, %378, %379, %380, %381 in 1 : vector<2x1x64xf32>, vector<2x1x64xf32>, vector<2x1x64xf32>, vector<2x1x64xf32>, vector<2x1x64xf32>, vector<2x1x64xf32>, vector<2x1x64xf32>, vector<2x1x64xf32> -> vector<2x8x64xf32>
    %383 = vector.shape_cast %331 : vector<2x64xf32> to vector<2x1x64xf32>
    %384 = vector.shape_cast %337 : vector<2x64xf32> to vector<2x1x64xf32>
    %385 = vector.shape_cast %343 : vector<2x64xf32> to vector<2x1x64xf32>
    %386 = vector.shape_cast %349 : vector<2x64xf32> to vector<2x1x64xf32>
    %387 = vector.shape_cast %355 : vector<2x64xf32> to vector<2x1x64xf32>
    %388 = vector.shape_cast %361 : vector<2x64xf32> to vector<2x1x64xf32>
    %389 = vector.shape_cast %367 : vector<2x64xf32> to vector<2x1x64xf32>
    %390 = vector.shape_cast %373 : vector<2x64xf32> to vector<2x1x64xf32>
    %391 = tpu.concatenate %383, %384, %385, %386, %387, %388, %389, %390 in 1 : vector<2x1x64xf32>, vector<2x1x64xf32>, vector<2x1x64xf32>, vector<2x1x64xf32>, vector<2x1x64xf32>, vector<2x1x64xf32>, vector<2x1x64xf32>, vector<2x1x64xf32> -> vector<2x8x64xf32>
    "tpu.trace_start"() <{level = 10 : i32, message = "btd,bsd->bts"}> : () -> ()
    %cst_58 = arith.constant dense<0.000000e+00> : vector<2x8x8xf32>
    %392 = tpu.matmul %382, %382, %cst_58 {dimension_numbers = #tpu.dot_dimension_numbers<[2], [2], [1], [1], [0, 0, 0, 1, 1, 1], [0], [0]>} : vector<2x8x64xf32>, vector<2x8x64xf32>, vector<2x8x8xf32> -> vector<2x8x8xf32>
    "tpu.trace_stop"() : () -> ()
    %cst_59 = arith.constant dense<0xFF800000> : vector<2x8xf32>
    %393 = vector.multi_reduction <maximumf>, %392, %cst_59 [2] : vector<2x8x8xf32> to vector<2x8xf32>
    %394 = vector.shape_cast %393 : vector<2x8xf32> to vector<2x8x1xf32>
    %395 = vector.broadcast %394 : vector<2x8x1xf32> to vector<2x8x8xf32>
    %396 = arith.subf %392, %395 : vector<2x8x8xf32>
    %397 = math.exp %396 : vector<2x8x8xf32>
    %cst_60 = arith.constant dense<0.000000e+00> : vector<2x8xf32>
    %398 = vector.multi_reduction <add>, %397, %cst_60 [2] : vector<2x8x8xf32> to vector<2x8xf32>
    %399 = vector.shape_cast %398 : vector<2x8xf32> to vector<2x8x1xf32>
    %400 = tpu.reciprocal %399 {approx = true} : vector<2x8x1xf32> -> vector<2x8x1xf32>
    %401 = vector.broadcast %400 : vector<2x8x1xf32> to vector<2x8x8xf32>
    %402 = arith.mulf %397, %401 : vector<2x8x8xf32>
    "tpu.trace_start"() <{level = 10 : i32, message = "bts,bsd->btd"}> : () -> ()
    %cst_61 = arith.constant dense<0.000000e+00> : vector<2x8x64xf32>
    %403 = tpu.matmul %402, %382, %cst_61 {dimension_numbers = #tpu.dot_dimension_numbers<[2], [1], [1], [2], [0, 0, 0, 1, 1, 2], [0], [0]>} : vector<2x8x8xf32>, vector<2x8x64xf32>, vector<2x8x64xf32> -> vector<2x8x64xf32>
    "tpu.trace_stop"() : () -> ()
    %404 = arith.addf %382, %403 : vector<2x8x64xf32>
    %405 = arith.addf %404, %391 : vector<2x8x64xf32>
    %cst_62 = arith.constant dense<0.000000e+00> : vector<2x64xf32>
    %406 = vector.multi_reduction <add>, %405, %cst_62 [1] : vector<2x8x64xf32> to vector<2x64xf32>
    %cst_63 = arith.constant 1.250000e-01 : f32
    %407 = vector.broadcast %cst_63 : f32 to vector<2x64xf32>
    %408 = arith.mulf %406, %407 : vector<2x64xf32>
    %409 = vector.shape_cast %408 : vector<2x64xf32> to vector<2x1x64xf32>
    %410 = vector.broadcast %409 : vector<2x1x64xf32> to vector<2x8x64xf32>
    %411 = arith.subf %405, %410 : vector<2x8x64xf32>
    %412 = arith.mulf %411, %411 : vector<2x8x64xf32>
    %cst_64 = arith.constant dense<0.000000e+00> : vector<2x64xf32>
    %413 = vector.multi_reduction <add>, %412, %cst_64 [1] : vector<2x8x64xf32> to vector<2x64xf32>
    %cst_65 = arith.constant 0.142857149 : f32
    %414 = vector.broadcast %cst_65 : f32 to vector<2x64xf32>
    %415 = arith.mulf %413, %414 : vector<2x64xf32>
    %416 = math.sqrt %415 : vector<2x64xf32>
    %417 = tpu.concatenate %408, %416 in 1 : vector<2x64xf32>, vector<2x64xf32> -> vector<2x128xf32>
    %c0_66 = arith.constant 0 : index
    %c0_67 = arith.constant 0 : index
    %c0_68 = arith.constant 0 : index
    %418 = vector.load %arg12[%c0_66, %c0_67, %c0_68] : memref<1x2x128xf32, #tpu.memory_space<vmem>>, vector<1x2x128xf32>
    %419 = vector.shape_cast %418 : vector<1x2x128xf32> to vector<2x128xf32>
    %420 = vector.shape_cast %417 : vector<2x128xf32> to vector<1x2x128xf32>
    tpu.vector_store %arg12[%c0_66, %c0_67, %c0_68], %420 {strides = array<i32>} : memref<1x2x128xf32, #tpu.memory_space<vmem>>, vector<1x2x128xf32>,
    %c0_69 = arith.constant 0 : index
    %c0_70 = arith.constant 0 : index
    %421 = vector.load %arg9[%c0_69, %c0_70] : memref<128x5xf32, #tpu.memory_space<vmem>>, vector<128x5xf32>
    %cst_71 = arith.constant dense<0.000000e+00> : vector<2x5xf32>
    %422 = tpu.matmul %417, %421, %cst_71 {dimension_numbers = #tpu.dot_dimension_numbers<[1], [0], [0], [1], [0, 0, 1, 1], [], []>} : vector<2x128xf32>, vector<128x5xf32>, vector<2x5xf32> -> vector<2x5xf32>
    %c0_72 = arith.constant 0 : index
    %c0_73 = arith.constant 0 : index
    %423 = vector.load %arg10[%c0_72, %c0_73] : memref<1x5xf32, #tpu.memory_space<vmem>>, vector<1x5xf32>
    %424 = vector.broadcast %423 : vector<1x5xf32> to vector<2x5xf32>
    %425 = arith.addf %422, %424 : vector<2x5xf32>
    %426 = arith.negf %425 : vector<2x5xf32>
    %427 = math.exp %426 : vector<2x5xf32>
    %cst_74 = arith.constant 1.000000e+00 : f32
    %428 = vector.broadcast %cst_74 : f32 to vector<2x5xf32>
    %429 = arith.addf %428, %427 : vector<2x5xf32>
    %430 = arith.divf %428, %429 : vector<2x5xf32>
    %c0_75 = arith.constant 0 : index
    %c0_76 = arith.constant 0 : index
    %c0_77 = arith.constant 0 : index
    %431 = vector.load %arg11[%c0_75, %c0_76, %c0_77] : memref<1x2x5xf32, #tpu.memory_space<vmem>>, vector<1x2x5xf32>
    %432 = vector.shape_cast %431 : vector<1x2x5xf32> to vector<2x5xf32>
    %433 = vector.shape_cast %430 : vector<2x5xf32> to vector<1x2x5xf32>
    tpu.vector_store %arg11[%c0_75, %c0_76, %c0_77], %433 {strides = array<i32>} : memref<1x2x5xf32, #tpu.memory_space<vmem>>, vector<1x2x5xf32>,
    return
  }
  func.func @transform_0(%arg0: i32) -> (i32, i32, i32) {
    %c0_i32 = arith.constant 0 : i32
    %c0_i32_0 = arith.constant 0 : i32
    %c0_i32_1 = arith.constant 0 : i32
    return %arg0, %c0_i32, %c0_i32_0 : i32, i32, i32
  }
  func.func @transform_1(%arg0: i32) -> (i32, i32) {
    %c0_i32 = arith.constant 0 : i32
    %c0_i32_0 = arith.constant 0 : i32
    %c0_i32_1 = arith.constant 0 : i32
    return %c0_i32, %c0_i32_0 : i32, i32
  }
  func.func @transform_2(%arg0: i32) -> (i32, i32) {
    %c0_i32 = arith.constant 0 : i32
    %c0_i32_0 = arith.constant 0 : i32
    %c0_i32_1 = arith.constant 0 : i32
    return %c0_i32, %c0_i32_0 : i32, i32
  }
  func.func @transform_3(%arg0: i32) -> (i32, i32) {
    %c0_i32 = arith.constant 0 : i32
    %c0_i32_0 = arith.constant 0 : i32
    %c0_i32_1 = arith.constant 0 : i32
    return %c0_i32, %c0_i32_0 : i32, i32
  }
  func.func @transform_4(%arg0: i32) -> (i32, i32) {
    %c0_i32 = arith.constant 0 : i32
    %c0_i32_0 = arith.constant 0 : i32
    %c0_i32_1 = arith.constant 0 : i32
    return %c0_i32, %c0_i32_0 : i32, i32
  }
  func.func @transform_5(%arg0: i32) -> (i32, i32) {
    %c0_i32 = arith.constant 0 : i32
    %c0_i32_0 = arith.constant 0 : i32
    %c0_i32_1 = arith.constant 0 : i32
    return %c0_i32, %c0_i32_0 : i32, i32
  }
  func.func @transform_6(%arg0: i32) -> (i32, i32) {
    %c0_i32 = arith.constant 0 : i32
    %c0_i32_0 = arith.constant 0 : i32
    %c0_i32_1 = arith.constant 0 : i32
    return %c0_i32, %c0_i32_0 : i32, i32
  }
  func.func @transform_7(%arg0: i32) -> (i32, i32) {
    %c0_i32 = arith.constant 0 : i32
    %c0_i32_0 = arith.constant 0 : i32
    %c0_i32_1 = arith.constant 0 : i32
    return %c0_i32, %c0_i32_0 : i32, i32
  }
  func.func @transform_8(%arg0: i32) -> (i32, i32) {
    %c0_i32 = arith.constant 0 : i32
    %c0_i32_0 = arith.constant 0 : i32
    %c0_i32_1 = arith.constant 0 : i32
    return %c0_i32, %c0_i32_0 : i32, i32
  }
  func.func @transform_9(%arg0: i32) -> (i32, i32) {
    %c0_i32 = arith.constant 0 : i32
    %c0_i32_0 = arith.constant 0 : i32
    %c0_i32_1 = arith.constant 0 : i32
    return %c0_i32, %c0_i32_0 : i32, i32
  }
  func.func @transform_10(%arg0: i32) -> (i32, i32, i32) {
    %c0_i32 = arith.constant 0 : i32
    %c0_i32_0 = arith.constant 0 : i32
    %c0_i32_1 = arith.constant 0 : i32
    return %arg0, %c0_i32, %c0_i32_0 : i32, i32, i32
  }
  func.func @transform_11(%arg0: i32) -> (i32, i32, i32) {
    %c0_i32 = arith.constant 0 : i32
    %c0_i32_0 = arith.constant 0 : i32
    %c0_i32_1 = arith.constant 0 : i32
    return %arg0, %c0_i32, %c0_i32_0 : i32, i32, i32
  }
}

</mosaic_0001>

<bundles_post_ra>
// kernel: _lambda_.1
= control target key start
LH: loop header
LB: loop body
LE: loop exit
PB: predicated region body
PF: predicated region fallthrough
CT: control target
= control target key end

     0   :  { %17 = vsyncpa [#allocation3], 0  ;;  %s3819_s0 = inlined_call_operand.vmem [shape: f32[2,8,16], index: 0, kind: input, shape index: {}]   ;;  %s3820_s1 = inlined_call_operand.hbm [shape: f32[16,256], index: 1, kind: input, shape index: {}]   ;;  %s3821_s2 = inlined_call_operand.vmem [shape: f32[1,256], index: 2, kind: input, shape index: {}]   ;;  %s3822_s3 = inlined_call_operand.hbm [shape: f32[16,64], index: 3, kind: input, shape index: {}]   ;;  %s3823_s4 = inlined_call_operand.vmem [shape: f32[1,64], index: 4, kind: input, shape index: {}]   ;;  %s3824_s5 = inlined_call_operand.vmem [shape: f32[64,256], index: 5, kind: input, shape index: {}]   ;;  %s3825_s6 = inlined_call_operand.vmem [shape: f32[1,256], index: 6, kind: input, shape index: {}]   ;;  %s3826_s7 = inlined_call_operand.hbm [shape: f32[128,128], index: 7, kind: input, shape index: {}]   ;;  %s3827_s8 = inlined_call_operand.vmem [shape: f32[128,5], index: 8, kind: input, shape index: {}]   ;;  %s3828_s9 = inlined_call_operand.vmem [shape: f32[1,5], index: 9, kind: input, shape index: {}]   ;;  %s3829_s10 = inlined_call_operand.hbm [shape: f32[1,2,5], index: 10, kind: output, shape index: {0}]   ;;  %s3830_s11 = inlined_call_operand.hbm [shape: f32[1,2,128], index: 11, kind: output, shape index: {1}]  }
   0x1   :  { %18 = vsyncpa [#allocation6], 0 }
   0x2   :  { %19 = vsyncpa [#allocation4], 0 }
   0x3   :  { %20 = vsyncpa [#allocation10], 0  ;;  %s2867_s17 = smov [#allocation5]   ;;  %s2749_s21 = scalar_lea.hbm %s3822_s3, 256 }
   0x4   :  { %s42_s18 = sshll.u32 %s2867_s17, 4  ;;  %p2750_p0 = scmp.ne.s32.totalorder %s3822_s3, %s2749_s21  ;;  %s43_s18 = int_to_ptr.vmem [resolvable:$true] %s42_s18 }
   0x5   :  { %p2753_p1 = scmp.lt.u32.totalorder %s2749_s21, %s3822_s3 }
   0x7   :  { %p2755_p2 = pnand %p2753_p1, %p2750_p0 }
   0x9   :  { %2758 = shalt.err (!%p2755_p2)
}
   0xa   :  { %s2759_s26 = scalar_lea.vmem %s43_s18, 256  ;;  %p2764_p4 = scmp.lt.s32.totalorder %s43_s18, %s43_s18 }
   0xb   :  { %p2760_p3 = scmp.ne.s32.totalorder %s43_s18, %s2759_s26  ;;  %p2765_p5 = scmp.lt.s32.totalorder %s2759_s26, %s2759_s26 }
   0xd   :  { %p2766_p6 = por %p2765_p5, %p2764_p4 }
   0xf   :  { %p2767_p7 = pnand %p2766_p6, %p2760_p3 }
  0x11   :  { %2770 = shalt.err (!%p2767_p7)
}
  0x12   :  { %s2868_s27 = smov 128   ;;  %s2869_s28 = smov 8  }
  0x13   :  { %48 = dma.hbm_to_vmem [thread:$0]  %s3822_s3, 256, %s43_s18, [#allocation6], %s2868_s27, %s2868_s27, %s2869_s28  }
  0x14   :  { %s2870_s12 = smov [#allocation2]   ;;  %s2771_s16 = scalar_lea.hbm %s3820_s1, 512 }
  0x15   :  { %s28_s13 = sshll.u32 %s2870_s12, 4  ;;  %p2772_p8 = scmp.ne.s32.totalorder %s3820_s1, %s2771_s16  ;;  %s29_s13 = int_to_ptr.vmem [resolvable:$true] %s28_s13 }
  0x16   :  { %p2775_p9 = scmp.lt.u32.totalorder %s2771_s16, %s3820_s1 }
  0x18   :  { %p2777_p10 = pnand %p2775_p9, %p2772_p8 }
  0x1a   :  { %2780 = shalt.err (!%p2777_p10)
}
  0x1b   :  { %s2781_s22 = scalar_lea.vmem %s29_s13, 512  ;;  %p2786_p12 = scmp.lt.s32.totalorder %s29_s13, %s29_s13 }
  0x1c   :  { %p2782_p11 = scmp.ne.s32.totalorder %s29_s13, %s2781_s22  ;;  %p2787_p13 = scmp.lt.s32.totalorder %s2781_s22, %s2781_s22 }
  0x1e   :  { %p2788_p0 = por %p2787_p13, %p2786_p12 }
  0x20   :  { %p2789_p1 = pnand %p2788_p0, %p2782_p11 }
  0x22   :  { %2792 = shalt.err (!%p2789_p1)
}
  0x23   :  { %s2871_s3 = smov 256   ;;  %s2872_s18 = smov 16  }
  0x24   :  { %34 = dma.hbm_to_vmem [thread:$0]  %s3820_s1, 512, %s29_s13, [#allocation3], %s2871_s3, %s2871_s3, %s2872_s18  }
  0x25   :  { %s2873_s25 = smov [#allocation7]   ;;  %s2793_s12 = scalar_lea.hbm %s3826_s7, 2048 }
  0x26   :  { %s60_s26 = sshll.u32 %s2873_s25, 4  ;;  %p2794_p2 = scmp.ne.s32.totalorder %s3826_s7, %s2793_s12  ;;  %s61_s26 = int_to_ptr.vmem [resolvable:$true] %s60_s26 }
  0x27   :  { %p2797_p3 = scmp.lt.u32.totalorder %s2793_s12, %s3826_s7 }
  0x29   :  { %p2799_p4 = pnand %p2797_p3, %p2794_p2 }
  0x2b   :  { %2802 = shalt.err (!%p2799_p4)
}
  0x2c   :  { %s2803_s19 = scalar_lea.vmem %s61_s26, 2048  ;;  %p2808_p6 = scmp.lt.s32.totalorder %s61_s26, %s61_s26 }
  0x2d   :  { %p2804_p5 = scmp.ne.s32.totalorder %s61_s26, %s2803_s19  ;;  %p2809_p7 = scmp.lt.s32.totalorder %s2803_s19, %s2803_s19 }
  0x2f   :  { %p2810_p8 = por %p2809_p7, %p2808_p6 }
  0x31   :  { %p2811_p9 = pnand %p2810_p8, %p2804_p5 }
  0x33   :  { %2814 = shalt.err (!%p2811_p9)
}
  0x34   :  { %66 = dma.hbm_to_vmem [thread:$0]  %s3826_s7, 2048, %s61_s26, [#allocation6], %s2868_s27, %s2868_s27, %s2869_s28  }
  0x35   :  { %2859 = dma.done.wait [#allocation3], 512  }
  0x36   :  { %2860 = vsyncadd [#allocation3], 4294966784 }
  0x37   :  { %2861 = dma.done.wait [#allocation6], 2304  }
  0x38   :  { %2862 = vsyncadd [#allocation6], 4294964992  ;;  %v2874_v0 = vmov 0.0   ;;  %v84_v1 = vld [vmem:[#allocation2 + $0x8] sm:$0xff]  ;;  %v86_v2 = vld [vmem:[#allocation2 + $0x18] sm:$0xff]  ;;  %vm99_vm0 = vcmask 130048   ;;  %v89_v36 = vlaneseq }
  0x39   :  { %170 = vmatprep.mubr.f32.mxu0 %v2874_v0  ;;  %2426 = vmatprep.subr.bf16.mxu1 %v2874_v0  ;;  %v83_v3 = vld [vmem:[#allocation2] sm:$0xff]  ;;  %v2621_v4 = vpack.c.bf16 %v86_v2, %v84_v1  ;;  %v85_v5 = vld [vmem:[#allocation2 + $0x10] sm:$0xff]  ;;  %v184_v8 = vld [vmem:[#allocation5 + $0x8] sm:$0xff]  ;;  %vm3831_vm1 = vcmask 1041409   ;;  %vm391_vm2 = vcmask 1043459   ;;  %vm3834_vm3 = vcmask 1041408  }
  0x3a   :  { %v2623_v6 = vpack.c.bf16 %v85_v5, %v83_v3  ;;  %v183_v7 = vld [vmem:[#allocation5] sm:$0xff]  ;;  %v270_v9 = vld [vmem:[%s3824_s5 + $0x8] sm:$0xff]  ;;  %v272_v11 = vld [vmem:[%s3824_s5 + $0x18] sm:$0xff]  ;;  %v3045_v37 = vshrl.u32 %v89_v36, 7  ;;  %vm3837_vm4 = vcmask 523264   ;;  %vm398_vm5 = vcmask 1045509  }
  0x3b   :  { %2622 = vmatprep.subr.bf16.mxu0 %v2621_v4  ;;  %v2625_v10 = vpack.c.bf16 %v184_v8, %v183_v7  ;;  %v81_v12 = vld [vmem:[%s3819_s0] sm:$0xff]  ;;  %v2629_v13 = vpack.c.bf16 %v272_v11, %v270_v9  ;;  %v82_v14 = vld [vmem:[%s3819_s0 + $0x8] sm:$0xff]  ;;  %v271_v16 = vld [vmem:[%s3824_s5 + $0x10] sm:$0xff]  ;;  %vm404_vm6 = vcmask 1047559   ;;  %vm3833_vm7 = vcmask 1043456   ;;  %s2876_s14 = smov 32  }
  0x3c   :  { %2624 = vmatpush1.bf16.msra.mxu0 %v2623_v6  ;;  %v269_v15 = vld [vmem:[%s3824_s5] sm:$0xff]  ;;  %v274_v18 = vld [vmem:[%s3824_s5 + $0x28] sm:$0xff]  ;;  %v276_v19 = vld [vmem:[%s3824_s5 + $0x38] sm:$0xff]  ;;  %v3048_v38 = vsub.s32 0, %v3045_v37  ;;  %v95_v40 = vsub.s32 1, %v3045_v37  ;;  %vm3832_vm8 = vcmask 1045504  }
  0x3d   :  { %2626 = vmatprep.subr.bf16.mxu0 %v2625_v10  ;;  %v2631_v17 = vpack.c.bf16 %v271_v16, %v269_v15  ;;  %v2633_v20 = vpack.c.bf16 %v276_v19, %v274_v18  ;;  %v273_v21 = vld [vmem:[%s3824_s5 + $0x20] sm:$0xff]  ;;  %v275_v22 = vld [vmem:[%s3824_s5 + $0x30] sm:$0xff]  ;;  %v278_v24 = vld [vmem:[%s3824_s5 + $0x48] sm:$0xff]  ;;  %vm3835_vm9 = vmmov 0   ;;  %s2878_s15 = smov 96   ;;  %vm551_vm10 = vcmp.ge.s32.totalorder %v3045_v37, 2 }
  0x3e   :  { %v2635_v23 = vpack.c.bf16 %v275_v22, %v273_v21  ;;  %v280_v25 = vld [vmem:[%s3824_s5 + $0x58] sm:$0xff]  ;;  %v277_v27 = vld [vmem:[%s3824_s5 + $0x40] sm:$0xff]  ;;  %v279_v28 = vld [vmem:[%s3824_s5 + $0x50] sm:$0xff]  ;;  %2442 = vmatprep.mubr.msk.bf16.mxu1 %vm3835_vm9, %v2874_v0  ;;  %vm552_vm11 = vcmp.lt.s32.totalorder %v3045_v37, 4  ;;  %vm559_vm14 = vcmp.ge.s32.totalorder %v3045_v37, 4  ;;  %vm560_vm15 = vcmp.lt.s32.totalorder %v3045_v37, 6 }
  0x3f   :  { %2295 = vmatmul.mubr.msk.f32.vlgmr.msra.gmra.mrb[0].mxu0 %vm99_vm0, %v81_v12  ;;  %v2637_v26 = vpack.c.bf16 %v280_v25, %v278_v24  ;;  %v2639_v29 = vpack.c.bf16 %v279_v28, %v277_v27  ;;  %v282_v30 = vld [vmem:[%s3824_s5 + $0x68] sm:$0xff]  ;;  %v284_v31 = vld [vmem:[%s3824_s5 + $0x78] sm:$0xff]  ;;  %v281_v33 = vld [vmem:[%s3824_s5 + $0x60] sm:$0xff] }
  0x40   :  { %176 = vmatprep.mubr.f32.mxu0 %v2874_v0  ;;  %2628 = vmatpush3.bf16.msra.mxu0 %v2625_v10  ;;  %v2641_v32 = vpack.c.bf16 %v284_v31, %v282_v30  ;;  %v283_v34 = vld [vmem:[%s3824_s5 + $0x70] sm:$0xff]  ;;  %v87_v39 = vld [vmem:[%s3821_s2] sm:$0x3]  ;;  %vm553_vm12 = vmand %vm551_vm10, %vm552_vm11 }
  0x41   :  { %2630 = vmatprep.subr.bf16.mxu0 %v2629_v13  ;;  %v2643_v35 = vpack.c.bf16 %v283_v34, %v281_v33  ;;  %v92_v41 = vrot.slane %v87_v39, %v3048_v38  ;;  %v96_v42 = vrot.slane %v87_v39, %v95_v40  ;;  %v2297_v62 = vld [vmem:[%s3823_s4] ss:$0 sm:$0xff] }
  0x43   :  { %2296 = vmatmul.mubr.msk.f32.gmra.mrb[2].mxu0 %vm99_vm0, %v82_v14 }
  0x44   :  { %2423 = vmatprep.mubr.msk.f32.mxu0 %vm99_vm0, %v81_v12 }
  0x47   :  { %2424 = vmatmul.mubr.msk.f32.vlgmr.msra.gmra.mrb[4].mxu0 %vm99_vm0, %v82_v14  ;;  %vm545_vm0 = vcmp.lt.s32.totalorder %v3045_v37, 2 }
  0x48   :  { %2632 = vmatpush1.bf16.msra.mxu0 %v2631_v17  ;;  %368 = vmatprep.mubr.f32.mxu0 %v2874_v0 }
  0x49   :  { %2634 = vmatprep.subr.bf16.mxu0 %v2633_v20 }
  0x4c   :  { %2636 = vmatpush1.bf16.msra.mxu0 %v2635_v23 }
  0x4d   :  { %2638 = vmatprep.subr.bf16.mxu0 %v2637_v26 }
  0x50   :  { %2640 = vmatpush1.bf16.msra.mxu0 %v2639_v29 }
  0x51   :  { %2642 = vmatprep.subr.bf16.mxu0 %v2641_v32 }
  0x54   :  { %2644 = vmatpush1.bf16.msra.mxu0 %v2643_v35 }
  0x55   :  { %2446 = vmatprep.subr.bf16.mxu0 %v2874_v0 }
 0x112   :  { %v172_v43 = vpop.f32.mrb[0].mxu0 }
 0x113   :  { %v3057_v44 = vadd.f32 %v172_v43, %v92_v41  ;;  %v174_v45 = vpop.f32.mrb[1].mxu0 }
 0x114   :  { %v3059_v46 = vadd.f32 %v174_v45, %v96_v42 }
 0x115   :  { %v413_v47 = vrot.slane %v3057_v44, 1  ;;  %v430_v48 = vrot.slane %v3057_v44, 2  ;;  %v449_v49 = vrot.slane %v3057_v44, 3  ;;  %v468_v50 = vrot.slane %v3057_v44, 4 }
 0x116   :  { %v389_v51 = vrot.slane %v3059_v46, 5  ;;  %v178_v52 = vpop.f32.mrb[2].mxu0  ;;  %v416_v53 = vrot.slane %v3059_v46, 4  ;;  %v434_v54 = vrot.slane %v3059_v46, 3  ;;  %v453_v55 = vrot.slane %v3059_v46, 2 }
 0x117   :  { %v179_v56 = vadd.f32 %v178_v52, %v92_v41  ;;  %v180_v57 = vpop.f32.mrb[3].mxu0  ;;  %v472_v58 = vrot.slane %v3059_v46, 1  ;;  %v485_v59 = vrot.slane %v3057_v44, 5  ;;  %v502_v60 = vrot.slane %v3057_v44, 6 }
 0x118   :  { %v181_v61 = vadd.f32 %v180_v57, %v96_v42  ;;  %v506_v63 = vrot.slane %v3059_v46, 7  ;;  %v521_v1 = vrot.slane %v3057_v44, 7  ;;  %v525_v2 = vrot.slane %v3059_v46, 6 }
 0x119   :  { %v383_v3 = vrot.slane %v179_v56, 7  ;;  %v414_v4 = vsel %vm3831_vm1, %v179_v56, %v413_v47  ;;  %v431_v5 = vrot.slane %v179_v56, 1  ;;  %v450_v6 = vrot.slane %v179_v56, 2 }
 0x11a   :  { %v390_v7 = vrot.slane %v181_v61, 4  ;;  %v2425_v8 = vpop.f32.mrb[4].mxu0  ;;  %v417_v9 = vrot.slane %v181_v61, 3  ;;  %v435_v10 = vrot.slane %v181_v61, 2  ;;  %v454_v11 = vrot.slane %v181_v61, 1 }
 0x11b   :  { %v385_v12 = vsel %vm3831_vm1, %v383_v3, %v3057_v44  ;;  %v264_v13 = vadd.f32 %v2425_v8, %v2297_v62  ;;  %v258_v14 = vpop.f32.mrb[5].mxu0  ;;  %v432_v15 = vsel %vm3831_vm1, %v431_v5, %v430_v48  ;;  %v451_v16 = vsel %vm3831_vm1, %v450_v6, %v449_v49 }
 0x11c   :  { %v392_v17 = vsel %vm391_vm2, %v390_v7, %v389_v51  ;;  %v259_v18 = vadd.f32 %v2297_v62, %v258_v14  ;;  %v418_v19 = vsel %vm391_vm2, %v417_v9, %v416_v53  ;;  %v436_v20 = vsel %vm391_vm2, %v435_v10, %v434_v54 }
 0x11d   :  { %v268_v21 = vmax.f32 %v264_v13, 0.0  ;;  %v3087_v22 = vsel %vm3834_vm3, %v385_v12, %v392_v17  ;;  %v3090_v23 = vsel %vm3834_vm3, %v414_v4, %v418_v19  ;;  %v3093_v24 = vsel %vm3834_vm3, %v432_v15, %v436_v20 }
 0x11e   :  { %v267_v25 = vmax.f32 %v259_v18, 0.0  ;;  %v455_v26 = vsel %vm391_vm2, %v454_v11, %v453_v55  ;;  %v469_v27 = vrot.slane %v179_v56, 3  ;;  %v473_v28 = vsel %vm391_vm2, %v181_v61, %v472_v58 }
 0x11f   :  { %v3098_v29 = vsel %vm3834_vm3, %v451_v16, %v455_v26  ;;  %v486_v30 = vrot.slane %v179_v56, 4  ;;  %v489_v31 = vrot.slane %v181_v61, 7  ;;  %v503_v32 = vrot.slane %v179_v56, 5 }
 0x120   :  { %2300 = vmatmul.mubr.msk.f32.vlgmr.msra.gmra.mrb[6].mxu0 %vm3837_vm4, %v267_v25  ;;  %v470_v33 = vsel %vm3831_vm1, %v469_v27, %v468_v50  ;;  %v507_v34 = vrot.slane %v181_v61, 6  ;;  %v522_v35 = vrot.slane %v179_v56, 6  ;;  %v526_v39 = vrot.slane %v181_v61, 5 }
 0x121   :  { %374 = vmatprep.mubr.f32.mxu0 %v2874_v0  ;;  %v3104_v41 = vsel %vm3834_vm3, %v470_v33, %v473_v28  ;;  %v487_v42 = vsel %vm3831_vm1, %v486_v30, %v485_v59  ;;  %v490_v43 = vsel %vm391_vm2, %v489_v31, %v3059_v46  ;;  %v504_v44 = vsel %vm3831_vm1, %v503_v32, %v502_v60  ;;  %v285_v46 = vld [vmem:[%s3825_s6] sm:$0x3]  ;;  %s2875_s6 = smov 64  }
 0x122   :  { %v3111_v45 = vsel %vm3834_vm3, %v487_v42, %v490_v43  ;;  %v508_v47 = vsel %vm391_vm2, %v507_v34, %v506_v63  ;;  %v523_v48 = vsel %vm3831_vm1, %v522_v35, %v521_v1  ;;  %v527_v49 = vsel %vm391_vm2, %v526_v39, %v525_v2  ;;  %vm561_vm1 = vmand %vm559_vm14, %vm560_vm15 }
 0x123   :  { %v3117_v50 = vsel %vm3834_vm3, %v504_v44, %v508_v47  ;;  %v3120_v51 = vsel %vm3834_vm3, %v523_v48, %v527_v49  ;;  %v290_v52 = vrot.slane %v285_v46, %v3048_v38  ;;  %v294_v53 = vrot.slane %v285_v46, %v95_v40 }
 0x124   :  { %2301 = vmatmul.mubr.msk.f32.gmra.mrb[8].mxu0 %vm3837_vm4, %v268_v21 }
 0x125   :  { %2462 = vmatprep.mubr.msk.bf16.mxu0 %vm3835_vm9, %v2874_v0 }
 0x1f3   :  { %v370_v54 = vpop.f32.mrb[6].mxu0 }
 0x1f4   :  { %v3129_v55 = vadd.f32 %v370_v54, %v290_v52  ;;  %v372_v56 = vpop.f32.mrb[7].mxu0 }
 0x1f5   :  { %v3131_v57 = vadd.f32 %v372_v56, %v294_v53 }
 0x1f6   :  { %v396_v58 = vrot.slane %v3129_v55, 4  ;;  %v420_v59 = vrot.slane %v3129_v55, 5  ;;  %v438_v60 = vrot.slane %v3129_v55, 6  ;;  %v457_v63 = vrot.slane %v3129_v55, 7 }
 0x1f7   :  { %v403_v61 = vrot.slane %v3131_v57, 1  ;;  %v376_v62 = vpop.f32.mrb[8].mxu0  ;;  %v442_v40 = vrot.slane %v3131_v57, 7  ;;  %v461_v1 = vrot.slane %v3131_v57, 6  ;;  %v478_v4 = vrot.slane %v3131_v57, 5 }
 0x1f8   :  { %v377_v2 = vadd.f32 %v376_v62, %v290_v52  ;;  %v378_v3 = vpop.f32.mrb[9].mxu0  ;;  %v492_v5 = vrot.slane %v3129_v55, 1  ;;  %v495_v6 = vrot.slane %v3131_v57, 4  ;;  %v510_v8 = vrot.slane %v3129_v55, 2 }
 0x1f9   :  { %v379_v7 = vadd.f32 %v378_v3, %v294_v53  ;;  %v514_v9 = vrot.slane %v3131_v57, 3  ;;  %v529_v10 = vrot.slane %v3129_v55, 3 }
 0x1fa   :  { %v397_v11 = vrot.slane %v377_v2, 3  ;;  %v421_v12 = vrot.slane %v377_v2, 4  ;;  %v439_v13 = vrot.slane %v377_v2, 5  ;;  %v458_v14 = vrot.slane %v377_v2, 6 }
 0x1fb   :  { %v405_v15 = vsel %vm404_vm6, %v379_v7, %v403_v61  ;;  %v424_v16 = vrot.slane %v379_v7, 7  ;;  %v443_v17 = vrot.slane %v379_v7, 6  ;;  %v462_v18 = vrot.slane %v379_v7, 5 }
 0x1fc   :  { %v399_v19 = vsel %vm398_vm5, %v397_v11, %v396_v58  ;;  %v422_v20 = vsel %vm398_vm5, %v421_v12, %v420_v59  ;;  %v440_v21 = vsel %vm398_vm5, %v439_v13, %v438_v60  ;;  %v459_v25 = vsel %vm398_vm5, %v458_v14, %v457_v63  ;;  %v579_v11 = vld [vmem:[#allocation7 + $0x10] sm:$0xff]  ;;  %v580_v13 = vld [vmem:[#allocation7 + $0x18] sm:$0xff] }
 0x1fd   :  { %v410_v26 = vsel %vm3833_vm7, %v3087_v22, %v399_v19  ;;  %v425_v27 = vsel %vm404_vm6, %v424_v16, %v3131_v57  ;;  %v428_v28 = vsel %vm3833_vm7, %v3090_v23, %v422_v20  ;;  %v444_v30 = vsel %vm404_vm6, %v443_v17, %v442_v40  ;;  %v582_v16 = vld [vmem:[#allocation7 + $0x28] sm:$0xff]  ;;  %v583_v19 = vld [vmem:[#allocation7 + $0x30] sm:$0xff]  ;;  %v584_v20 = vld [vmem:[#allocation7 + $0x38] sm:$0xff] }
 0x1fe   :  { %v412_v31 = vsel %vm3832_vm8, %v410_v26, %v405_v15  ;;  %v3160_v32 = vsel %vm3832_vm8, %v428_v28, %v425_v27  ;;  %v447_v33 = vsel %vm3833_vm7, %v3093_v24, %v440_v21  ;;  %v463_v34 = vsel %vm404_vm6, %v462_v18, %v461_v1  ;;  %v581_v15 = vld [vmem:[#allocation7 + $0x20] sm:$0xff]  ;;  %v586_v26 = vld [vmem:[#allocation7 + $0x48] sm:$0xff]  ;;  %v587_v28 = vld [vmem:[#allocation7 + $0x50] sm:$0xff] }
 0x1ff   :  { %v2303_v35 = vmul.f32 -1.442695, %v412_v31  ;;  %v3166_v22 = vsel %vm3832_vm8, %v447_v33, %v444_v30  ;;  %v466_v39 = vsel %vm3833_vm7, %v3098_v29, %v459_v25  ;;  %v475_v23 = vrot.slane %v377_v2, 7  ;;  %v585_v25 = vld [vmem:[#allocation7 + $0x40] sm:$0xff]  ;;  %v588_v30 = vld [vmem:[#allocation7 + $0x58] sm:$0xff] }
 0x200   :  { %v3171_v42 = vsel %vm3832_vm8, %v466_v39, %v463_v34  ;;  %v479_v43 = vrot.slane %v379_v7, 4  ;;  %v493_v44 = vsel %vm398_vm5, %v377_v2, %v492_v5  ;;  %v496_v47 = vrot.slane %v379_v7, 3  ;;  %v589_v33 = vld [vmem:[#allocation7 + $0x60] sm:$0xff]  ;;  %v590_v34 = vld [vmem:[#allocation7 + $0x68] sm:$0xff]  ;;  %v591_v39 = vld [vmem:[#allocation7 + $0x70] sm:$0xff] }
 0x201   :  { %2685 = vpow2.f32 %v2303_v35  ;;  %v476_v24 = vsel %vm398_vm5, %v475_v23, %v3129_v55  ;;  %v500_v48 = vsel %vm3833_vm7, %v3111_v45, %v493_v44  ;;  %v511_v49 = vrot.slane %v377_v2, 1  ;;  %v592_v23 = vld [vmem:[#allocation7 + $0x78] sm:$0xff] }
 0x202   :  { %v480_v46 = vsel %vm404_vm6, %v479_v43, %v478_v4  ;;  %v483_v29 = vsel %vm3833_vm7, %v3104_v41, %v476_v24  ;;  %v497_v52 = vsel %vm404_vm6, %v496_v47, %v495_v6  ;;  %v515_v53 = vrot.slane %v379_v7, 2 }
 0x203   :  { %v3183_v54 = vsel %vm3832_vm8, %v483_v29, %v480_v46  ;;  %v3186_v56 = vsel %vm3832_vm8, %v500_v48, %v497_v52  ;;  %v512_v55 = vsel %vm398_vm5, %v511_v49, %v510_v8  ;;  %v530_v58 = vrot.slane %v377_v2, 2 }
 0x204   :  { %v516_v45 = vsel %vm404_vm6, %v515_v53, %v514_v9  ;;  %v519_v59 = vsel %vm3833_vm7, %v3117_v50, %v512_v55  ;;  %v533_v60 = vrot.slane %v3131_v57, 2  ;;  %v534_v41 = vrot.slane %v379_v7, 1  ;;  %v577_v9 = vld [vmem:[#allocation7] sm:$0xff] }
 0x205   :  { %v3194_v61 = vsel %vm3832_vm8, %v519_v59, %v516_v45  ;;  %v531_v62 = vsel %vm398_vm5, %v530_v58, %v529_v10  ;;  %v578_v10 = vld [vmem:[#allocation7 + $0x8] sm:$0xff]  ;;  %v3216_v14 = vpack.c.bf16 %v580_v13, %v579_v11  ;;  %v3223_v18 = vpack.c.bf16 %v582_v16, %v581_v15 }
 0x206   :  { %v535_v40 = vsel %vm404_vm6, %v534_v41, %v533_v60  ;;  %v538_v63 = vsel %vm3833_vm7, %v3120_v51, %v531_v62  ;;  %v3213_v12 = vpack.c.bf16 %v578_v10, %v577_v9  ;;  %v3229_v21 = vpack.c.bf16 %v584_v20, %v583_v19 }
 0x207   :  { %v3201_v1 = vsel %vm3832_vm8, %v538_v63, %v535_v40  ;;  %v3235_v27 = vpack.c.bf16 %v586_v26, %v585_v25  ;;  %v3241_v31 = vpack.c.bf16 %v588_v30, %v587_v28  ;;  %v3250_v35 = vpack.c.bf16 %v590_v34, %v589_v33 }
 0x208   :  { %2427 = vmatpush3.bf16.msra.mxu1 %v3213_v12  ;;  %2447 = vmatpush3.bf16.msra.mxu0 %v3213_v12  ;;  %v3256_v43 = vpack.c.bf16 %v592_v23, %v591_v39  ;;  %v543_v24 = vand.u32 127, %v89_v36 }
 0x209   :  { %2428 = vmatprep.subr.bf16.mxu1 %v2874_v0  ;;  %2448 = vmatprep.subr.bf16.mxu0 %v2874_v0 }
 0x20a   :  { %vm554_vm13 = vcmp.ge.s32.totalorder %v543_v24, 32  ;;  %vm549_vm2 = vcmp.lt.s32.totalorder %v543_v24, 32  ;;  %vm556_vm6 = vcmp.lt.s32.totalorder %v543_v24, 64  ;;  %vm562_vm8 = vcmp.ge.s32.totalorder %v543_v24, 64 }
 0x20b   :  { %v2686_v2 = vpop.eup %2685  ;;  %vm555_vm5 = vmand %vm553_vm12, %vm554_vm13  ;;  %vm564_vm4 = vcmp.lt.s32.totalorder %v543_v24, 96  ;;  %vm567_vm12 = vcmp.ge.s32.totalorder %v3045_v37, 6  ;;  %vm570_vm13 = vcmp.ge.s32.totalorder %v543_v24, 96 }
 0x20c   :  { %v604_v3 = vadd.f32 1.0, %v2686_v2  ;;  %2429 = vmatpush3.bf16.msra.mxu1 %v3216_v14  ;;  %2449 = vmatpush3.bf16.msra.mxu0 %v3216_v14  ;;  %vm550_vm7 = vmand %vm545_vm0, %vm549_vm2  ;;  %vm636_vm0 = vcmask 261120  }
 0x20d   :  { %2430 = vmatprep.subr.bf16.mxu1 %v2874_v0  ;;  %2450 = vmatprep.subr.bf16.mxu0 %v2874_v0  ;;  %vm557_vm3 = vmand %vm555_vm5, %vm556_vm6  ;;  %vm639_vm5 = vcmask 785408  }
 0x20e   :  { %2687 = vrcp.f32 %v604_v3  ;;  %vm563_vm9 = vmand %vm561_vm1, %vm562_vm8  ;;  %vm3838_vm1 = vcmask 523264  }
 0x20f   :  { %vm558_vm10 = vmor %vm550_vm7, %vm557_vm3  ;;  %vm3839_vm3 = vmmov 0  }
 0x210   :  { %2431 = vmatpush3.bf16.msra.mxu1 %v3223_v18  ;;  %2451 = vmatpush3.bf16.msra.mxu0 %v3223_v18  ;;  %vm565_vm11 = vmand %vm563_vm9, %vm564_vm4 }
 0x211   :  { %2432 = vmatprep.subr.bf16.mxu1 %v2874_v0  ;;  %2452 = vmatprep.subr.bf16.mxu0 %v2874_v0  ;;  %vm566_vm14 = vmor %vm558_vm10, %vm565_vm11  ;;  %vm1495_vm11 = vcmask 1040384  }
 0x212   :  { %vm571_vm15 = vmand %vm567_vm12, %vm570_vm13  ;;  %vm1500_vm12 = vcmask 1042432   ;;  %vm1505_vm13 = vcmask 1044480  }
 0x213   :  { %vm574_vm2 = vmor %vm566_vm14, %vm571_vm15  ;;  %vm1510_vm14 = vcmask 1046528   ;;  %vm3846_vm15 = vcmask 1041408  }
 0x214   :  { %2433 = vmatpush3.bf16.msra.mxu1 %v3229_v21  ;;  %2453 = vmatpush3.bf16.msra.mxu0 %v3229_v21  ;;  %v3287_v29 = vsel %vm574_vm2, 1.0, %v2874_v0  ;;  %vm3840_vm4 = vmmov %vm3838_vm1 }
 0x215   :  { %2434 = vmatprep.subr.bf16.mxu1 %v2874_v0  ;;  %2454 = vmatprep.subr.bf16.mxu0 %v2874_v0  ;;  %vm3841_vm7 = vmmov %vm3838_vm1 }
 0x216   :  { %vm3842_vm8 = vmmov %vm3838_vm1 }
 0x217   :  { %vm3843_vm9 = vmmov %vm3838_vm1 }
 0x218   :  { %v3203_v50 = vpop.eup %2687  ;;  %2435 = vmatpush3.bf16.msra.mxu1 %v3235_v27  ;;  %2455 = vmatpush3.bf16.msra.mxu0 %v3235_v27  ;;  %vm3844_vm6 = vmmov %vm3838_vm1 }
 0x219   :  { %v607_v57 = vmul.f32 2.0, %v3203_v50  ;;  %v609_v51 = vmul.f32 0.0, %v3203_v50  ;;  %2436 = vmatprep.subr.bf16.mxu1 %v2874_v0  ;;  %2456 = vmatprep.subr.bf16.mxu0 %v2874_v0  ;;  %vm3845_vm10 = vmmov %vm3838_vm1 }
 0x21b   :  { %v2304_v4 = vadd.f32 -1.0, %v607_v57 }
 0x21c   :  { %2437 = vmatpush3.bf16.msra.mxu1 %v3241_v31  ;;  %2457 = vmatpush3.bf16.msra.mxu0 %v3241_v31 }
 0x21d   :  { %611 = vrot.lane.b32.xlu0 %v2304_v4, %s2875_s6  ;;  %2438 = vmatprep.subr.bf16.mxu1 %v2874_v0 }
 0x21e   :  { %2458 = vmatprep.subr.bf16.mxu0 %v2874_v0 }
 0x220   :  { %2439 = vmatpush3.bf16.msra.mxu1 %v3250_v35  ;;  %2459 = vmatpush3.bf16.msra.mxu0 %v3250_v35 }
 0x221   :  { %2440 = vmatprep.subr.bf16.mxu1 %v2874_v0  ;;  %2460 = vmatprep.subr.bf16.mxu0 %v2874_v0 }
 0x224   :  { %2441 = vmatpush3.bf16.msra.mxu1 %v3256_v43  ;;  %2461 = vmatpush3.bf16.msra.mxu0 %v3256_v43 }
 0x225   :  { %2466 = vmatprep.subr.bf16.mxu1 %v2874_v0  ;;  %2486 = vmatprep.subr.bf16.mxu0 %v2874_v0 }
 0x28f   :  { %v612_v5 = vpop.permute.xlu0 %611 }
 0x290   :  { %v614_v6 = vmul.f32 %v3203_v50, %v612_v5 }
 0x292   :  { %616 = vrot.lane.b32.xlu0 %v614_v6, %s2876_s14 }
 0x304   :  { %v617_v7 = vpop.permute.xlu0 %616 }
 0x305   :  { %v3210_v8 = vadd.f32 %v617_v7, %v609_v51 }
 0x307   :  { %2689 = vtanh.f32 %v3210_v8 }
 0x311   :  { %v2690_v17 = vpop.eup %2689 }
 0x312   :  { %622 = vrot.lane.b32.xlu1 %v2690_v17, %s2875_s6 }
 0x384   :  { %v623_v44 = vpop.permute.xlu1 %622 }
 0x385   :  { %v3267_v47 = vmul.f32 %v3203_v50, %v623_v44 }
 0x387   :  { %630 = vrot.lane.b32.xlu0 %v3267_v47, %s2875_s6  ;;  %627 = vrot.lane.b32.xlu1 %v3267_v47, %s2876_s14 }
 0x38b   :  { %633 = vrot.lane.b32.xlu1 %v3267_v47, %s2878_s15 }
 0x3f9   :  { %v3282_v36 = vpop.permute.xlu1 %627  ;;  %v631_v48 = vpop.permute.xlu0 %630 }
 0x3fa   :  { %v637_v49 = vsel %vm636_vm0, %v3282_v36, %v631_v48 }
 0x3fd   :  { %v634_v46 = vpop.permute.xlu1 %633 }
 0x3fe   :  { %v638_v52 = vsel %vm3838_vm1, %v637_v49, %v634_v46 }
 0x3ff   :  { %v640_v53 = vsel %vm639_vm5, %v638_v52, %v3267_v47 }
 0x400   :  { %v641_v55 = vmul.f32 %v3287_v29, %v640_v53 }
 0x402   :  { %v642_v58 = vpack.c.bf16 %v641_v55, %v641_v55 }
 0x404   :  { %2443 = vmatmul.mubr.bf16.vlgmr.msra.gmra.mrb[0].mxu1 %v642_v58 }
 0x405   :  { %2467 = vmatpush3.bf16.msra.mxu1 %v3213_v12  ;;  %2482 = vmatprep.mubr.msk.bf16.mxu1 %vm3839_vm3, %v2874_v0 }
 0x406   :  { %2468 = vmatprep.subr.bf16.mxu1 %v2874_v0 }
 0x409   :  { %2469 = vmatpush3.bf16.msra.mxu1 %v3216_v14 }
 0x40a   :  { %2470 = vmatprep.subr.bf16.mxu1 %v2874_v0 }
 0x40d   :  { %2471 = vmatpush3.bf16.msra.mxu1 %v3223_v18 }
 0x40e   :  { %2472 = vmatprep.subr.bf16.mxu1 %v2874_v0 }
 0x411   :  { %2473 = vmatpush3.bf16.msra.mxu1 %v3229_v21 }
 0x412   :  { %2474 = vmatprep.subr.bf16.mxu1 %v2874_v0 }
 0x415   :  { %2475 = vmatpush3.bf16.msra.mxu1 %v3235_v27 }
 0x416   :  { %2476 = vmatprep.subr.bf16.mxu1 %v2874_v0 }
 0x419   :  { %2477 = vmatpush3.bf16.msra.mxu1 %v3241_v31 }
 0x41a   :  { %2478 = vmatprep.subr.bf16.mxu1 %v2874_v0 }
 0x41d   :  { %2479 = vmatpush3.bf16.msra.mxu1 %v3250_v35 }
 0x41e   :  { %2480 = vmatprep.subr.bf16.mxu1 %v2874_v0 }
 0x421   :  { %2481 = vmatpush3.bf16.msra.mxu1 %v3256_v43 }
 0x422   :  { %2506 = vmatprep.subr.bf16.mxu1 %v2874_v0 }
 0x4d7   :  { %v677_v45 = vpop.f32.mrb[0].mxu1 }
 0x4d8   :  { %v683_v59 = vadd.f32 %v677_v45, %v3160_v32  ;;  %v2444_v60 = vpop.f32.mrb[1].mxu1 }
 0x4d9   :  { %v680_v41 = vpop.f32.mrb[2].mxu1 }
 0x4da   :  { %v2305_v62 = vmul.f32 -1.442695, %v683_v59  ;;  %v2445_v40 = vpop.f32.mrb[3].mxu1 }
 0x4dc   :  { %2691 = vpow2.f32 %v2305_v62 }
 0x4e6   :  { %v2692_v63 = vpop.eup %2691 }
 0x4e7   :  { %v687_v2 = vadd.f32 1.0, %v2692_v63 }
 0x4e9   :  { %2693 = vrcp.f32 %v687_v2 }
 0x4f3   :  { %v2694_v3 = vpop.eup %2693 }
 0x4f4   :  { %v690_v50 = vmul.f32 2.0, %v2694_v3  ;;  %v692_v6 = vmul.f32 %v2694_v3, %v3210_v8 }
 0x4f6   :  { %v2306_v57 = vadd.f32 -1.0, %v690_v50 }
 0x4f8   :  { %694 = vrot.lane.b32.xlu0 %v2306_v57, %s2875_s6 }
 0x56a   :  { %v695_v4 = vpop.permute.xlu0 %694 }
 0x56b   :  { %v697_v5 = vmul.f32 %v2694_v3, %v695_v4 }
 0x56d   :  { %699 = vrot.lane.b32.xlu1 %v697_v5, %s2876_s14 }
 0x5df   :  { %v700_v32 = vpop.permute.xlu1 %699 }
 0x5e0   :  { %v702_v51 = vadd.f32 %v700_v32, %v692_v6 }
 0x5e2   :  { %2695 = vtanh.f32 %v702_v51 }
 0x5ec   :  { %v2696_v7 = vpop.eup %2695 }
 0x5ed   :  { %705 = vrot.lane.b32.xlu0 %v2696_v7, %s2875_s6 }
 0x65f   :  { %v706_v9 = vpop.permute.xlu0 %705 }
 0x660   :  { %v3316_v10 = vmul.f32 %v2694_v3, %v706_v9 }
 0x662   :  { %713 = vrot.lane.b32.xlu0 %v3316_v10, %s2875_s6  ;;  %710 = vrot.lane.b32.xlu1 %v3316_v10, %s2876_s14 }
 0x666   :  { %716 = vrot.lane.b32.xlu1 %v3316_v10, %s2878_s15 }
 0x6d4   :  { %v3324_v11 = vpop.permute.xlu1 %710  ;;  %v714_v8 = vpop.permute.xlu0 %713 }
 0x6d5   :  { %v719_v13 = vsel %vm636_vm0, %v3324_v11, %v714_v8 }
 0x6d8   :  { %v717_v15 = vpop.permute.xlu1 %716 }
 0x6d9   :  { %v720_v16 = vsel %vm3840_vm4, %v719_v13, %v717_v15  ;;  %vm3851_vm4 = vcmask 1045504  }
 0x6da   :  { %v721_v17 = vsel %vm639_vm5, %v720_v16, %v3316_v10 }
 0x6db   :  { %v722_v19 = vmul.f32 %v3287_v29, %v721_v17 }
 0x6dd   :  { %v723_v20 = vpack.c.bf16 %v722_v19, %v722_v19 }
 0x6df   :  { %2463 = vmatmul.mubr.bf16.vlgmr.msra.gmra.mrb[12].mxu0 %v723_v20 }
 0x6e0   :  { %2487 = vmatpush3.bf16.msra.mxu0 %v3213_v12  ;;  %2502 = vmatprep.mubr.msk.bf16.mxu0 %vm3839_vm3, %v2874_v0 }
 0x6e1   :  { %2488 = vmatprep.subr.bf16.mxu0 %v2874_v0 }
 0x6e4   :  { %2489 = vmatpush3.bf16.msra.mxu0 %v3216_v14 }
 0x6e5   :  { %2490 = vmatprep.subr.bf16.mxu0 %v2874_v0 }
 0x6e8   :  { %2491 = vmatpush3.bf16.msra.mxu0 %v3223_v18 }
 0x6e9   :  { %2492 = vmatprep.subr.bf16.mxu0 %v2874_v0 }
 0x6ec   :  { %2493 = vmatpush3.bf16.msra.mxu0 %v3229_v21 }
 0x6ed   :  { %2494 = vmatprep.subr.bf16.mxu0 %v2874_v0 }
 0x6f0   :  { %2495 = vmatpush3.bf16.msra.mxu0 %v3235_v27 }
 0x6f1   :  { %2496 = vmatprep.subr.bf16.mxu0 %v2874_v0 }
 0x6f4   :  { %2497 = vmatpush3.bf16.msra.mxu0 %v3241_v31 }
 0x6f5   :  { %2498 = vmatprep.subr.bf16.mxu0 %v2874_v0 }
 0x6f8   :  { %2499 = vmatpush3.bf16.msra.mxu0 %v3250_v35 }
 0x6f9   :  { %2500 = vmatprep.subr.bf16.mxu0 %v2874_v0 }
 0x6fc   :  { %2501 = vmatpush3.bf16.msra.mxu0 %v3256_v43 }
 0x6fd   :  { %2526 = vmatprep.subr.bf16.mxu0 %v2874_v0 }
 0x7b2   :  { %v758_v25 = vpop.f32.mrb[12].mxu0 }
 0x7b3   :  { %v764_v26 = vadd.f32 %v758_v25, %v3166_v22  ;;  %v2464_v28 = vpop.f32.mrb[13].mxu0 }
 0x7b4   :  { %v761_v30 = vpop.f32.mrb[14].mxu0 }
 0x7b5   :  { %v2307_v33 = vmul.f32 -1.442695, %v764_v26  ;;  %v2465_v34 = vpop.f32.mrb[15].mxu0 }
 0x7b7   :  { %2697 = vpow2.f32 %v2307_v33 }
 0x7c1   :  { %v2698_v39 = vpop.eup %2697 }
 0x7c2   :  { %v768_v23 = vadd.f32 1.0, %v2698_v39 }
 0x7c4   :  { %2699 = vrcp.f32 %v768_v23 }
 0x7ce   :  { %v2700_v44 = vpop.eup %2699 }
 0x7cf   :  { %v771_v24 = vmul.f32 2.0, %v2700_v44  ;;  %v773_v52 = vmul.f32 %v2700_v44, %v702_v51 }
 0x7d1   :  { %v2308_v48 = vadd.f32 -1.0, %v771_v24 }
 0x7d3   :  { %775 = vrot.lane.b32.xlu0 %v2308_v48, %s2875_s6 }
 0x845   :  { %v776_v49 = vpop.permute.xlu0 %775 }
 0x846   :  { %v778_v46 = vmul.f32 %v2700_v44, %v776_v49 }
 0x848   :  { %780 = vrot.lane.b32.xlu1 %v778_v46, %s2876_s14 }
 0x8ba   :  { %v781_v53 = vpop.permute.xlu1 %780 }
 0x8bb   :  { %v783_v22 = vadd.f32 %v781_v53, %v773_v52 }
 0x8bd   :  { %2701 = vtanh.f32 %v783_v22 }
 0x8c7   :  { %v2702_v55 = vpop.eup %2701 }
 0x8c8   :  { %786 = vrot.lane.b32.xlu0 %v2702_v55, %s2875_s6 }
 0x93a   :  { %v787_v58 = vpop.permute.xlu0 %786 }
 0x93b   :  { %v3354_v45 = vmul.f32 %v2700_v44, %v787_v58 }
 0x93d   :  { %794 = vrot.lane.b32.xlu0 %v3354_v45, %s2875_s6  ;;  %791 = vrot.lane.b32.xlu1 %v3354_v45, %s2876_s14 }
 0x941   :  { %797 = vrot.lane.b32.xlu1 %v3354_v45, %s2878_s15 }
 0x9af   :  { %v3362_v59 = vpop.permute.xlu1 %791  ;;  %v795_v60 = vpop.permute.xlu0 %794 }
 0x9b0   :  { %v800_v41 = vsel %vm636_vm0, %v3362_v59, %v795_v60 }
 0x9b3   :  { %v798_v62 = vpop.permute.xlu1 %797 }
 0x9b4   :  { %v801_v40 = vsel %vm3841_vm7, %v800_v41, %v798_v62  ;;  %vm3852_vm7 = vmmov %vm3851_vm4 }
 0x9b5   :  { %v802_v63 = vsel %vm639_vm5, %v801_v40, %v3354_v45 }
 0x9b6   :  { %v803_v2 = vmul.f32 %v3287_v29, %v802_v63 }
 0x9b8   :  { %v804_v3 = vpack.c.bf16 %v803_v2, %v803_v2 }
 0x9ba   :  { %2483 = vmatmul.mubr.bf16.vlgmr.msra.gmra.mrb[4].mxu1 %v804_v3 }
 0x9bb   :  { %2507 = vmatpush3.bf16.msra.mxu1 %v3213_v12  ;;  %2522 = vmatprep.mubr.msk.bf16.mxu1 %vm3839_vm3, %v2874_v0 }
 0x9bc   :  { %2508 = vmatprep.subr.bf16.mxu1 %v2874_v0 }
 0x9bf   :  { %2509 = vmatpush3.bf16.msra.mxu1 %v3216_v14 }
 0x9c0   :  { %2510 = vmatprep.subr.bf16.mxu1 %v2874_v0 }
 0x9c3   :  { %2511 = vmatpush3.bf16.msra.mxu1 %v3223_v18 }
 0x9c4   :  { %2512 = vmatprep.subr.bf16.mxu1 %v2874_v0 }
 0x9c7   :  { %2513 = vmatpush3.bf16.msra.mxu1 %v3229_v21 }
 0x9c8   :  { %2514 = vmatprep.subr.bf16.mxu1 %v2874_v0 }
 0x9cb   :  { %2515 = vmatpush3.bf16.msra.mxu1 %v3235_v27 }
 0x9cc   :  { %2516 = vmatprep.subr.bf16.mxu1 %v2874_v0 }
 0x9cf   :  { %2517 = vmatpush3.bf16.msra.mxu1 %v3241_v31 }
 0x9d0   :  { %2518 = vmatprep.subr.bf16.mxu1 %v2874_v0 }
 0x9d3   :  { %2519 = vmatpush3.bf16.msra.mxu1 %v3250_v35 }
 0x9d4   :  { %2520 = vmatprep.subr.bf16.mxu1 %v2874_v0 }
 0x9d7   :  { %2521 = vmatpush3.bf16.msra.mxu1 %v3256_v43 }
 0x9d8   :  { %2546 = vmatprep.subr.bf16.mxu1 %v2874_v0 }
 0xa8d   :  { %v839_v50 = vpop.f32.mrb[4].mxu1 }
 0xa8e   :  { %v845_v57 = vadd.f32 %v839_v50, %v3171_v42  ;;  %v2484_v4 = vpop.f32.mrb[5].mxu1 }
 0xa8f   :  { %v842_v5 = vpop.f32.mrb[6].mxu1 }
 0xa90   :  { %v2309_v6 = vmul.f32 -1.442695, %v845_v57  ;;  %v2485_v32 = vpop.f32.mrb[7].mxu1 }
 0xa92   :  { %2703 = vpow2.f32 %v2309_v6 }
 0xa9c   :  { %v2704_v51 = vpop.eup %2703 }
 0xa9d   :  { %v849_v7 = vadd.f32 1.0, %v2704_v51 }
 0xa9f   :  { %2705 = vrcp.f32 %v849_v7 }
 0xaa9   :  { %v2706_v9 = vpop.eup %2705 }
 0xaaa   :  { %v852_v8 = vmul.f32 2.0, %v2706_v9  ;;  %v854_v17 = vmul.f32 %v2706_v9, %v783_v22 }
 0xaac   :  { %v2310_v13 = vadd.f32 -1.0, %v852_v8 }
 0xaae   :  { %856 = vrot.lane.b32.xlu0 %v2310_v13, %s2875_s6 }
 0xb20   :  { %v857_v15 = vpop.permute.xlu0 %856 }
 0xb21   :  { %v859_v16 = vmul.f32 %v2706_v9, %v857_v15 }
 0xb23   :  { %861 = vrot.lane.b32.xlu1 %v859_v16, %s2876_s14 }
 0xb95   :  { %v862_v19 = vpop.permute.xlu1 %861 }
 0xb96   :  { %v864_v42 = vadd.f32 %v862_v19, %v854_v17 }
 0xb98   :  { %2707 = vtanh.f32 %v864_v42 }
 0xba2   :  { %v2708_v20 = vpop.eup %2707 }
 0xba3   :  { %867 = vrot.lane.b32.xlu0 %v2708_v20, %s2875_s6 }
 0xc15   :  { %v868_v25 = vpop.permute.xlu0 %867 }
 0xc16   :  { %v3392_v26 = vmul.f32 %v2706_v9, %v868_v25 }
 0xc18   :  { %875 = vrot.lane.b32.xlu0 %v3392_v26, %s2875_s6  ;;  %872 = vrot.lane.b32.xlu1 %v3392_v26, %s2876_s14 }
 0xc1c   :  { %878 = vrot.lane.b32.xlu1 %v3392_v26, %s2878_s15 }
 0xc8a   :  { %v3400_v28 = vpop.permute.xlu1 %872  ;;  %v876_v30 = vpop.permute.xlu0 %875 }
 0xc8b   :  { %v881_v33 = vsel %vm636_vm0, %v3400_v28, %v876_v30 }
 0xc8e   :  { %v879_v34 = vpop.permute.xlu1 %878 }
 0xc8f   :  { %v882_v39 = vsel %vm3842_vm8, %v881_v33, %v879_v34  ;;  %vm3853_vm8 = vmmov %vm3844_vm6 }
 0xc90   :  { %v883_v23 = vsel %vm639_vm5, %v882_v39, %v3392_v26 }
 0xc91   :  { %v884_v44 = vmul.f32 %v3287_v29, %v883_v23 }
 0xc93   :  { %v885_v24 = vpack.c.bf16 %v884_v44, %v884_v44 }
 0xc95   :  { %2503 = vmatmul.mubr.bf16.vlgmr.msra.gmra.mrb[16].mxu0 %v885_v24 }
 0xc96   :  { %2527 = vmatpush3.bf16.msra.mxu0 %v3213_v12  ;;  %2542 = vmatprep.mubr.msk.bf16.mxu0 %vm3839_vm3, %v2874_v0 }
 0xc97   :  { %2528 = vmatprep.subr.bf16.mxu0 %v2874_v0 }
 0xc9a   :  { %2529 = vmatpush3.bf16.msra.mxu0 %v3216_v14 }
 0xc9b   :  { %2530 = vmatprep.subr.bf16.mxu0 %v2874_v0 }
 0xc9e   :  { %2531 = vmatpush3.bf16.msra.mxu0 %v3223_v18 }
 0xc9f   :  { %2532 = vmatprep.subr.bf16.mxu0 %v2874_v0 }
 0xca2   :  { %2533 = vmatpush3.bf16.msra.mxu0 %v3229_v21 }
 0xca3   :  { %2534 = vmatprep.subr.bf16.mxu0 %v2874_v0 }
 0xca6   :  { %2535 = vmatpush3.bf16.msra.mxu0 %v3235_v27 }
 0xca7   :  { %2536 = vmatprep.subr.bf16.mxu0 %v2874_v0 }
 0xcaa   :  { %2537 = vmatpush3.bf16.msra.mxu0 %v3241_v31 }
 0xcab   :  { %2538 = vmatprep.subr.bf16.mxu0 %v2874_v0 }
 0xcae   :  { %2539 = vmatpush3.bf16.msra.mxu0 %v3250_v35 }
 0xcaf   :  { %2540 = vmatprep.subr.bf16.mxu0 %v2874_v0 }
 0xcb2   :  { %2541 = vmatpush3.bf16.msra.mxu0 %v3256_v43 }
 0xcb3   :  { %2566 = vmatprep.subr.mxu0 %v2874_v0 }
 0xd68   :  { %v920_v48 = vpop.f32.mrb[16].mxu0 }
 0xd69   :  { %v926_v49 = vadd.f32 %v920_v48, %v3183_v54  ;;  %v2504_v46 = vpop.f32.mrb[17].mxu0 }
 0xd6a   :  { %v923_v52 = vpop.f32.mrb[18].mxu0 }
 0xd6b   :  { %v2311_v53 = vmul.f32 -1.442695, %v926_v49  ;;  %v2505_v22 = vpop.f32.mrb[19].mxu0 }
 0xd6d   :  { %2709 = vpow2.f32 %v2311_v53 }
 0xd77   :  { %v2710_v55 = vpop.eup %2709 }
 0xd78   :  { %v930_v58 = vadd.f32 1.0, %v2710_v55 }
 0xd7a   :  { %2711 = vrcp.f32 %v930_v58 }
 0xd84   :  { %v2712_v60 = vpop.eup %2711 }
 0xd85   :  { %v933_v41 = vmul.f32 2.0, %v2712_v60  ;;  %v935_v2 = vmul.f32 %v2712_v60, %v864_v42 }
 0xd87   :  { %v2312_v62 = vadd.f32 -1.0, %v933_v41 }
 0xd89   :  { %937 = vrot.lane.b32.xlu0 %v2312_v62, %s2875_s6 }
 0xdfb   :  { %v938_v40 = vpop.permute.xlu0 %937 }
 0xdfc   :  { %v940_v63 = vmul.f32 %v2712_v60, %v938_v40 }
 0xdfe   :  { %942 = vrot.lane.b32.xlu1 %v940_v63, %s2876_s14 }
 0xe70   :  { %v943_v3 = vpop.permute.xlu1 %942 }
 0xe71   :  { %v945_v54 = vadd.f32 %v943_v3, %v935_v2 }
 0xe73   :  { %2713 = vtanh.f32 %v945_v54 }
 0xe7d   :  { %v2714_v50 = vpop.eup %2713 }
 0xe7e   :  { %948 = vrot.lane.b32.xlu0 %v2714_v50, %s2875_s6 }
 0xef0   :  { %v949_v57 = vpop.permute.xlu0 %948 }
 0xef1   :  { %v3430_v4 = vmul.f32 %v2712_v60, %v949_v57 }
 0xef3   :  { %956 = vrot.lane.b32.xlu0 %v3430_v4, %s2875_s6  ;;  %953 = vrot.lane.b32.xlu1 %v3430_v4, %s2876_s14 }
 0xef7   :  { %959 = vrot.lane.b32.xlu1 %v3430_v4, %s2878_s15 }
 0xf65   :  { %v3438_v5 = vpop.permute.xlu1 %953  ;;  %v957_v6 = vpop.permute.xlu0 %956 }
 0xf66   :  { %v962_v32 = vsel %vm636_vm0, %v3438_v5, %v957_v6 }
 0xf69   :  { %v960_v51 = vpop.permute.xlu1 %959 }
 0xf6a   :  { %v963_v7 = vsel %vm3843_vm9, %v962_v32, %v960_v51 }
 0xf6b   :  { %v964_v9 = vsel %vm639_vm5, %v963_v7, %v3430_v4 }
 0xf6c   :  { %v965_v8 = vmul.f32 %v3287_v29, %v964_v9 }
 0xf6e   :  { %v966_v13 = vpack.c.bf16 %v965_v8, %v965_v8 }
 0xf70   :  { %2523 = vmatmul.mubr.bf16.vlgmr.msra.gmra.mrb[8].mxu1 %v966_v13 }
 0xf71   :  { %2547 = vmatpush3.bf16.msra.mxu1 %v3213_v12  ;;  %2562 = vmatprep.mubr.msk.bf16.mxu1 %vm3839_vm3, %v2874_v0 }
 0xf72   :  { %2548 = vmatprep.subr.bf16.mxu1 %v2874_v0 }
 0xf75   :  { %2549 = vmatpush3.bf16.msra.mxu1 %v3216_v14 }
 0xf76   :  { %2550 = vmatprep.subr.bf16.mxu1 %v2874_v0 }
 0xf79   :  { %2551 = vmatpush3.bf16.msra.mxu1 %v3223_v18 }
 0xf7a   :  { %2552 = vmatprep.subr.bf16.mxu1 %v2874_v0 }
 0xf7d   :  { %2553 = vmatpush3.bf16.msra.mxu1 %v3229_v21 }
 0xf7e   :  { %2554 = vmatprep.subr.bf16.mxu1 %v2874_v0 }
 0xf81   :  { %2555 = vmatpush3.bf16.msra.mxu1 %v3235_v27 }
 0xf82   :  { %2556 = vmatprep.subr.bf16.mxu1 %v2874_v0 }
 0xf85   :  { %2557 = vmatpush3.bf16.msra.mxu1 %v3241_v31 }
 0xf86   :  { %2558 = vmatprep.subr.bf16.mxu1 %v2874_v0 }
 0xf89   :  { %2559 = vmatpush3.bf16.msra.mxu1 %v3250_v35 }
 0xf8a   :  { %2560 = vmatprep.subr.bf16.mxu1 %v2874_v0 }
 0xf8d   :  { %2561 = vmatpush3.bf16.msra.mxu1 %v3256_v43 }
0x1043   :  { %v1001_v12 = vpop.f32.mrb[8].mxu1 }
0x1044   :  { %v1007_v14 = vadd.f32 %v1001_v12, %v3186_v56  ;;  %v2524_v18 = vpop.f32.mrb[9].mxu1 }
0x1045   :  { %v1004_v21 = vpop.f32.mrb[10].mxu1 }
0x1046   :  { %v2313_v15 = vmul.f32 -1.442695, %v1007_v14  ;;  %v2525_v16 = vpop.f32.mrb[11].mxu1 }
0x1048   :  { %2715 = vpow2.f32 %v2313_v15 }
0x1052   :  { %v2716_v27 = vpop.eup %2715 }
0x1053   :  { %v1011_v17 = vadd.f32 1.0, %v2716_v27 }
0x1055   :  { %2717 = vrcp.f32 %v1011_v17 }
0x105f   :  { %v2718_v31 = vpop.eup %2717 }
0x1060   :  { %v1014_v19 = vmul.f32 2.0, %v2718_v31  ;;  %v1016_v43 = vmul.f32 %v2718_v31, %v945_v54 }
0x1062   :  { %v2314_v42 = vadd.f32 -1.0, %v1014_v19 }
0x1064   :  { %1018 = vrot.lane.b32.xlu0 %v2314_v42, %s2875_s6 }
0x10d6   :  { %v1019_v35 = vpop.permute.xlu0 %1018 }
0x10d7   :  { %v1021_v20 = vmul.f32 %v2718_v31, %v1019_v35 }
0x10d9   :  { %1023 = vrot.lane.b32.xlu1 %v1021_v20, %s2876_s14 }
0x114b   :  { %v1024_v25 = vpop.permute.xlu1 %1023 }
0x114c   :  { %v1026_v56 = vadd.f32 %v1024_v25, %v1016_v43 }
0x114e   :  { %2719 = vtanh.f32 %v1026_v56 }
0x1158   :  { %v2720_v30 = vpop.eup %2719 }
0x1159   :  { %1029 = vrot.lane.b32.xlu0 %v2720_v30, %s2875_s6 }
0x11cb   :  { %v1030_v33 = vpop.permute.xlu0 %1029 }
0x11cc   :  { %v3467_v34 = vmul.f32 %v2718_v31, %v1030_v33 }
0x11ce   :  { %1037 = vrot.lane.b32.xlu0 %v3467_v34, %s2875_s6  ;;  %1034 = vrot.lane.b32.xlu1 %v3467_v34, %s2876_s14 }
0x11d2   :  { %1040 = vrot.lane.b32.xlu1 %v3467_v34, %s2878_s15 }
0x1240   :  { %v3475_v39 = vpop.permute.xlu1 %1034  ;;  %v1038_v23 = vpop.permute.xlu0 %1037 }
0x1241   :  { %v1043_v44 = vsel %vm636_vm0, %v3475_v39, %v1038_v23  ;;  %v1226_v23 = vrot.slane %v3316_v10, 2 }
0x1244   :  { %v1041_v24 = vpop.permute.xlu1 %1040 }
0x1245   :  { %v1044_v48 = vsel %vm3844_vm6, %v1043_v44, %v1041_v24 }
0x1246   :  { %v1045_v49 = vsel %vm639_vm5, %v1044_v48, %v3467_v34 }
0x1247   :  { %v1046_v46 = vmul.f32 %v3287_v29, %v1045_v49 }
0x1249   :  { %v1047_v52 = vpack.c.bf16 %v1046_v46, %v1046_v46  ;;  %v1206_v46 = vrot.slane %v3467_v34, 2  ;;  %v2879_v34 = vmov 1966171168  }
0x124b   :  { %2543 = vmatmul.mubr.bf16.vlgmr.msra.gmra.mrb[20].mxu0 %v1047_v52  ;;  %v1211_v52 = vrot.slane %v3430_v4, 2 }
0x124c   :  { %2568 = vmatprep.mubr.msk.f32.mxu0 %vm3839_vm3, %v2874_v0 }
0x131e   :  { %v1082_v53 = vpop.f32.mrb[20].mxu0 }
0x131f   :  { %v1088_v22 = vadd.f32 %v1082_v53, %v3194_v61  ;;  %v2544_v55 = vpop.f32.mrb[21].mxu0 }
0x1320   :  { %v1085_v58 = vpop.f32.mrb[22].mxu0  ;;  %v1234_v55 = vrot.slane %v3267_v47, 2 }
0x1321   :  { %v2315_v60 = vmul.f32 -1.442695, %v1088_v22  ;;  %v2545_v41 = vpop.f32.mrb[23].mxu0  ;;  %v1241_v58 = vunpack.c.l.s4 %v2879_v34 }
0x1323   :  { %2721 = vpow2.f32 %v2315_v60  ;;  %v1242_v60 = vunpack.c.0.s8 %v1241_v58 }
0x132d   :  { %v2722_v62 = vpop.eup %2721 }
0x132e   :  { %v1092_v40 = vadd.f32 1.0, %v2722_v62 }
0x1330   :  { %2723 = vrcp.f32 %v1092_v40 }
0x133a   :  { %v2724_v63 = vpop.eup %2723 }
0x133b   :  { %v1095_v2 = vmul.f32 2.0, %v2724_v63  ;;  %v1097_v57 = vmul.f32 %v2724_v63, %v1026_v56 }
0x133d   :  { %v2316_v3 = vadd.f32 -1.0, %v1095_v2 }
0x133f   :  { %1099 = vrot.lane.b32.xlu0 %v2316_v3, %s2875_s6 }
0x13b1   :  { %v1100_v54 = vpop.permute.xlu0 %1099 }
0x13b2   :  { %v1102_v50 = vmul.f32 %v2724_v63, %v1100_v54 }
0x13b4   :  { %1104 = vrot.lane.b32.xlu1 %v1102_v50, %s2876_s14 }
0x1426   :  { %v1105_v6 = vpop.permute.xlu1 %1104 }
0x1427   :  { %v1107_v61 = vadd.f32 %v1105_v6, %v1097_v57 }
0x1429   :  { %2725 = vtanh.f32 %v1107_v61 }
0x1433   :  { %v2726_v32 = vpop.eup %2725 }
0x1434   :  { %1110 = vrot.lane.b32.xlu0 %v2726_v32, %s2875_s6 }
0x14a6   :  { %v1111_v51 = vpop.permute.xlu0 %1110 }
0x14a7   :  { %v1113_v7 = vmul.f32 %v2724_v63, %v1111_v51 }
0x14a9   :  { %1118 = vrot.lane.b32.xlu0 %v1113_v7, %s2875_s6  ;;  %1115 = vrot.lane.b32.xlu1 %v1113_v7, %s2876_s14  ;;  %v1201_v33 = vrot.slane %v1113_v7, 2 }
0x14ad   :  { %1121 = vrot.lane.b32.xlu1 %v1113_v7, %s2878_s15 }
0x151b   :  { %v3492_v9 = vpop.permute.xlu1 %1115  ;;  %v1119_v8 = vpop.permute.xlu0 %1118 }
0x151c   :  { %v1124_v13 = vsel %vm636_vm0, %v3492_v9, %v1119_v8 }
0x151f   :  { %v1122_v12 = vpop.permute.xlu1 %1121 }
0x1520   :  { %v1125_v14 = vsel %vm3845_vm10, %v1124_v13, %v1122_v12  ;;  %vm3856_vm10 = vmmov %vm3851_vm4 }
0x1521   :  { %v1126_v18 = vsel %vm639_vm5, %v1125_v14, %v1113_v7  ;;  %vm3849_vm5 = vcmask 1043456  }
0x1522   :  { %v1127_v21 = vmul.f32 %v3287_v29, %v1126_v18  ;;  %vm3850_vm1 = vmmov %vm3849_vm5 }
0x1523   :  { %vm3854_vm9 = vmmov %vm3850_vm1 }
0x1524   :  { %v1128_v15 = vpack.c.bf16 %v1127_v21, %v1127_v21 }
0x1526   :  { %2563 = vmatmul.mubr.bf16.vlgmr.msra.gmra.mrb[12].mxu1 %v1128_v15 }
0x1527   :  { %2618 = vmatprep.mubr.msk.f32.mxu1 %vm3839_vm3, %v2874_v0 }
0x15f9   :  { %v1163_v16 = vpop.f32.mrb[12].mxu1 }
0x15fa   :  { %v1169_v27 = vadd.f32 %v1163_v16, %v3201_v1  ;;  %v2564_v17 = vpop.f32.mrb[13].mxu1  ;;  %v1216_v1 = vrot.slane %v3392_v26, 2  ;;  %v1221_v26 = vrot.slane %v3354_v45, 2  ;;  %v3521_v45 = vsub.s32 %v1242_v60, %v3045_v37 }
0x15fb   :  { %v1166_v31 = vpop.f32.mrb[14].mxu1 }
0x15fc   :  { %v2317_v19 = vmul.f32 -1.442695, %v1169_v27  ;;  %v2565_v42 = vpop.f32.mrb[15].mxu1 }
0x15fe   :  { %2727 = vpow2.f32 %v2317_v19 }
0x1608   :  { %v2728_v35 = vpop.eup %2727 }
0x1609   :  { %v1173_v20 = vadd.f32 1.0, %v2728_v35 }
0x160b   :  { %2729 = vrcp.f32 %v1173_v20 }
0x1615   :  { %v2730_v43 = vpop.eup %2729 }
0x1616   :  { %v1176_v25 = vmul.f32 2.0, %v2730_v43  ;;  %v1178_v44 = vmul.f32 %v2730_v43, %v1107_v61 }
0x1618   :  { %v2318_v56 = vadd.f32 -1.0, %v1176_v25 }
0x161a   :  { %1180 = vrot.lane.b32.xlu0 %v2318_v56, %s2875_s6 }
0x168c   :  { %v1181_v29 = vpop.permute.xlu0 %1180 }
0x168d   :  { %v1183_v30 = vmul.f32 %v2730_v43, %v1181_v29 }
0x168f   :  { %1185 = vrot.lane.b32.xlu1 %v1183_v30, %s2876_s14 }
0x1693   :  { %1202 = vrot.lane.b32.xlu1 %v1201_v33, %s2875_s6 }
0x1697   :  { %1217 = vrot.lane.b32.xlu1 %v1216_v1, %s2875_s6 }
0x169b   :  { %1227 = vrot.lane.b32.xlu1 %v1226_v23, %s2875_s6 }
0x1701   :  { %v1186_v24 = vpop.permute.xlu1 %1185 }
0x1702   :  { %v1188_v48 = vadd.f32 %v1186_v24, %v1178_v44 }
0x1704   :  { %2731 = vtanh.f32 %v1188_v48 }
0x1705   :  { %v1203_v4 = vpop.permute.xlu1 %1202 }
0x1706   :  { %v1205_v62 = vsel %vm636_vm0, %v3324_v11, %v1203_v4 }
0x1707   :  { %v1271_v63 = vrot.slane %v1205_v62, %v3521_v45  ;;  %v1538_v47 = vcombine.high %v1205_v62, %v1205_v62 }
0x1709   :  { %v1218_v41 = vpop.permute.xlu1 %1217  ;;  %v1272_v50 = vcombine.high %v1271_v63, %v1271_v63  ;;  %v1545_v37 = vrot.slane %v1538_v47, %v3521_v45 }
0x170a   :  { %v1220_v2 = vsel %vm636_vm0, %v3438_v5, %v1218_v41  ;;  %v1279_v5 = vrot.slane %v1271_v63, %v3521_v45 }
0x170b   :  { %v1607_v54 = vcombine.high %v1220_v2, %v1220_v2  ;;  %v1340_v61 = vrot.slane %v1220_v2, %v3521_v45  ;;  %v3538_v7 = vrot.slane %v1272_v50, %v3521_v45  ;;  %v1546_v13 = vcombine.high %v1545_v37, %v1545_v37 }
0x170c   :  { %v1553_v21 = vrot.slane %v1545_v37, %v3521_v45  ;;  %v3545_v27 = vrot.slane %v1279_v5, %v3048_v38 }
0x170d   :  { %v1228_v3 = vpop.permute.xlu1 %1227  ;;  %v1614_v32 = vrot.slane %v1607_v54, %v3521_v45  ;;  %v1341_v14 = vcombine.high %v1340_v61, %v1340_v61  ;;  %v1432_v17 = vrot.slane %v3538_v7, %v3048_v38  ;;  %v3551_v42 = vrot.slane %v1546_v13, %v3521_v45 }
0x170e   :  { %v2732_v49 = vpop.eup %2731  ;;  %v1230_v57 = vsel %vm636_vm0, %v3492_v9, %v1228_v3  ;;  %v3564_v30 = vrot.slane %v1553_v21, %v3048_v38 }
0x170f   :  { %1191 = vrot.lane.b32.xlu0 %v2732_v49, %s2875_s6  ;;  %v1386_v51 = vrot.slane %v1230_v57, %v3521_v45  ;;  %v1653_v8 = vcombine.high %v1230_v57, %v1230_v57  ;;  %v1622_v25 = vrot.slane %v1614_v32, %v3521_v45  ;;  %v1706_v49 = vrot.slane %v3551_v42, %v3048_v38 }
0x1711   :  { %v1387_v15 = vcombine.high %v1386_v51, %v1386_v51  ;;  %v1660_v31 = vrot.slane %v1653_v8, %v3521_v45  ;;  %v1394_v56 = vrot.slane %v1386_v51, %v3521_v45 }
0x1713   :  { %1207 = vrot.lane.b32.xlu0 %v1206_v46, %s2875_s6  ;;  %v3570_v1 = vrot.slane %v1387_v15, %v3521_v45 }
0x1715   :  { %v1482_v58 = vrot.slane %v3570_v1, %v3048_v38 }
0x1717   :  { %1212 = vrot.lane.b32.xlu0 %v1211_v52, %s2875_s6  ;;  %v1668_v52 = vrot.slane %v1660_v31, %v3521_v45 }
0x1719   :  { %v3599_v2 = vrot.slane %v1668_v52, %v3048_v38 }
0x171b   :  { %1222 = vrot.lane.b32.xlu0 %v1221_v26, %s2875_s6 }
0x1781   :  { %v1192_v10 = vpop.permute.xlu0 %1191 }
0x1782   :  { %v1194_v53 = vmul.f32 %v2730_v43, %v1192_v10  ;;  %v3558_v43 = vrot.slane %v1341_v14, %v3521_v45 }
0x1784   :  { %v1196_v22 = vrot.slane %v1194_v53, 2  ;;  %1231 = vrot.lane.b32.xlu0 %v1194_v53, %s2876_s14  ;;  %v1462_v10 = vrot.slane %v3558_v43, %v3048_v38  ;;  %v3583_v53 = vrot.slane %v1622_v25, %v3048_v38 }
0x1785   :  { %v1208_v40 = vpop.permute.xlu0 %1207 }
0x1786   :  { %1197 = vrot.lane.b32.xlu1 %v1196_v22, %s2875_s6  ;;  %v1210_v11 = vsel %vm636_vm0, %v3362_v59, %v1208_v40  ;;  %v1615_v59 = vcombine.high %v1614_v32, %v1614_v32  ;;  %v3586_v22 = vrot.slane %v1394_v56, %v3048_v38 }
0x1787   :  { %v1561_v9 = vcombine.high %v1210_v11, %v1210_v11  ;;  %v1294_v16 = vrot.slane %v1210_v11, %v3521_v45 }
0x1788   :  { %v3567_v33 = vrot.slane %v1615_v59, %v3521_v45 }
0x1789   :  { %v1213_v6 = vpop.permute.xlu0 %1212  ;;  %v1568_v35 = vrot.slane %v1561_v9, %v3521_v45  ;;  %v1295_v23 = vcombine.high %v1294_v16, %v1294_v16  ;;  %v1302_v4 = vrot.slane %v1294_v16, %v3521_v45 }
0x178a   :  { %1235 = vrot.lane.b32.xlu1 %v1234_v55, %s2875_s6  ;;  %v1215_v12 = vsel %vm636_vm0, %v3400_v28, %v1213_v6  ;;  %v1348_v28 = vrot.slane %v1340_v61, %v3521_v45  ;;  %v1736_v34 = vrot.slane %v3567_v33, %v3048_v38 }
0x178b   :  { %v1584_v19 = vcombine.high %v1215_v12, %v1215_v12  ;;  %v1317_v29 = vrot.slane %v1215_v12, %v3521_v45  ;;  %v1569_v26 = vcombine.high %v1568_v35, %v1568_v35  ;;  %v1309_v60 = vrot.slane %v1295_v23, %v3521_v45 }
0x178c   :  { %v3577_v46 = vrot.slane %v1348_v28, %v3048_v38  ;;  %v1576_v47 = vrot.slane %v1568_v35, %v3521_v45  ;;  %v1438_v6 = vrot.slane %v1302_v4, %v3048_v38 }
0x178d   :  { %v1223_v18 = vpop.permute.xlu0 %1222  ;;  %v1591_v44 = vrot.slane %v1584_v19, %v3521_v45  ;;  %v1318_v55 = vcombine.high %v1317_v29, %v1317_v29  ;;  %v3603_v3 = vrot.slane %v1569_v26, %v3521_v45  ;;  %v1325_v54 = vrot.slane %v1317_v29, %v3521_v45 }
0x178e   :  { %v1225_v20 = vsel %vm636_vm0, %v3475_v39, %v1223_v18  ;;  %v1661_v39 = vcombine.high %v1660_v31, %v1660_v31  ;;  %v1442_v37 = vrot.slane %v1309_v60, %v3048_v38  ;;  %v1712_v13 = vrot.slane %v1576_v47, %v3048_v38 }
0x178f   :  { %v1363_v24 = vrot.slane %v1225_v20, %v3521_v45  ;;  %v1630_v48 = vcombine.high %v1225_v20, %v1225_v20  ;;  %v1592_v62 = vcombine.high %v1591_v44, %v1591_v44  ;;  %v1332_v50 = vrot.slane %v1318_v55, %v3521_v45 }
0x1790   :  { %v3595_v41 = vrot.slane %v1661_v39, %v3521_v45  ;;  %v1599_v57 = vrot.slane %v1591_v44, %v3521_v45  ;;  %v1716_v9 = vrot.slane %v3603_v3, %v3048_v38  ;;  %v1448_v18 = vrot.slane %v1325_v54, %v3048_v38 }
0x1791   :  { %v1364_v40 = vcombine.high %v1363_v24, %v1363_v24  ;;  %v1637_v63 = vrot.slane %v1630_v48, %v3521_v45  ;;  %v1371_v61 = vrot.slane %v1363_v24, %v3521_v45  ;;  %v3612_v32 = vrot.slane %v1592_v62, %v3521_v45 }
0x1792   :  { %v1452_v21 = vrot.slane %v1332_v50, %v3048_v38  ;;  %v1722_v59 = vrot.slane %v1599_v57, %v3048_v38 }
0x1793   :  { %v1378_v51 = vrot.slane %v1364_v40, %v3521_v45  ;;  %v1638_v5 = vcombine.high %v1637_v63, %v1637_v63  ;;  %v1645_v15 = vrot.slane %v1637_v63, %v3521_v45  ;;  %v1468_v16 = vrot.slane %v1371_v61, %v3048_v38 }
0x1794   :  { %v1726_v20 = vrot.slane %v3612_v32, %v3048_v38 }
0x1795   :  { %v1472_v25 = vrot.slane %v1378_v51, %v3048_v38  ;;  %v1652_v56 = vrot.slane %v1638_v5, %v3521_v45  ;;  %v1742_v48 = vrot.slane %v1645_v15, %v3048_v38 }
0x17f8   :  { %v1198_v11 = vpop.permute.xlu1 %1197 }
0x17f9   :  { %v1200_v8 = vsel %vm636_vm0, %v3282_v36, %v1198_v11  ;;  %v1232_v36 = vpop.permute.xlu0 %1231 }
0x17fa   :  { %v1246_v12 = vrot.slane %v1200_v8, %v3521_v45  ;;  %v1513_v14 = vcombine.high %v1200_v8, %v1200_v8 }
0x17fc   :  { %v1247_v31 = vcombine.high %v1246_v12, %v1246_v12  ;;  %v1254_v19 = vrot.slane %v1246_v12, %v3521_v45  ;;  %v1520_v28 = vrot.slane %v1513_v14, %v3521_v45  ;;  %v1236_v35 = vpop.permute.xlu1 %1235  ;;  %v1756_v12 = vrot.slane %v3595_v41, %v3048_v38 }
0x17fd   :  { %v1238_v29 = vsel %vm636_vm0, %v1232_v36, %v1236_v35  ;;  %vm3847_vm0 = vmmov %vm3846_vm15 }
0x17fe   :  { %v1261_v23 = vrot.slane %v1247_v31, %v3521_v45  ;;  %v1496_v39 = vsel %vm1495_vm11, %v1254_v19, %v3545_v27  ;;  %v1521_v44 = vcombine.high %v1520_v28, %v1520_v28  ;;  %v1528_v24 = vrot.slane %v1520_v28, %v3521_v45  ;;  %vm3848_vm2 = vmmov %vm3847_vm0 }
0x17ff   :  { %v1498_v52 = vsel %vm3846_vm15, %v1496_v39, %v1438_v6  ;;  %v1409_v26 = vrot.slane %v1238_v29, %v3521_v45  ;;  %v1676_v55 = vcombine.high %v1238_v29, %v1238_v29  ;;  %vm3855_vm6 = vmmov %vm3847_vm0 }
0x1800   :  { %v1497_v4 = vsel %vm1495_vm11, %v1261_v23, %v1432_v17  ;;  %v1501_v60 = vsel %vm1500_vm12, %v1498_v52, %v1448_v18  ;;  %v1535_v62 = vrot.slane %v1521_v44, %v3521_v45  ;;  %v1769_v27 = vsel %vm1495_vm11, %v1528_v24, %v3564_v30  ;;  %vm3858_vm15 = vmmov %vm3853_vm8 }
0x1801   :  { %v1499_v40 = vsel %vm3847_vm0, %v1497_v4, %v1442_v37  ;;  %v1771_v63 = vsel %vm3848_vm2, %v1769_v27, %v1712_v13  ;;  %v1410_v47 = vcombine.high %v1409_v26, %v1409_v26  ;;  %v1417_v3 = vrot.slane %v1409_v26, %v3521_v45  ;;  %vm3860_vm0 = vmmov %vm3851_vm4  ;;  %v2165_v4 = vld [vmem:[%s3827_s8 + $0x8] sm:$0xff] }
0x1802   :  { %v1770_v7 = vsel %vm1495_vm11, %v1535_v62, %v1706_v49  ;;  %v1683_v17 = vrot.slane %v1676_v55, %v3521_v45  ;;  %v1503_v54 = vsel %vm3849_vm5, %v1501_v60, %v3577_v46  ;;  %v1502_v50 = vsel %vm1500_vm12, %v1499_v40, %v1452_v21  ;;  %vm3857_vm11 = vmmov %vm3850_vm1  ;;  %v2164_v55 = vld [vmem:[%s3827_s8] sm:$0xff]  ;;  %v2166_v60 = vld [vmem:[%s3827_s8 + $0x10] sm:$0xff] }
0x1803   :  { %v1424_v30 = vrot.slane %v1410_v47, %v3521_v45  ;;  %v1488_v57 = vrot.slane %v1417_v3, %v3048_v38  ;;  %v1506_v6 = vsel %vm1505_vm13, %v1503_v54, %v1468_v16  ;;  %v1504_v42 = vsel %vm3850_vm1, %v1502_v50, %v1462_v10  ;;  %vm3861_vm2 = vmmov %vm3853_vm8  ;;  %v2169_v47 = vld [vmem:[%s3827_s8 + $0x28] sm:$0xff]  ;;  %v2172_v50 = vld [vmem:[%s3827_s8 + $0x40] sm:$0xff] }
0x1804   :  { %v1684_v37 = vcombine.high %v1683_v17, %v1683_v17  ;;  %v1691_v49 = vrot.slane %v1683_v17, %v3521_v45  ;;  %v1508_v61 = vsel %vm3851_vm4, %v1506_v6, %v3586_v22  ;;  %v1507_v46 = vsel %vm1505_vm13, %v1504_v42, %v1472_v25  ;;  %v2171_v17 = vld [vmem:[%s3827_s8 + $0x38] sm:$0xff]  ;;  %v2174_v6 = vld [vmem:[%s3827_s8 + $0x50] sm:$0xff]  ;;  %vm3864_vm5 = vmmov %vm3861_vm2 }
0x1805   :  { %v1492_v11 = vrot.slane %v1424_v30, %v3048_v38  ;;  %v3672_v32 = vsel %vm1510_vm14, %v1508_v61, %v1488_v57  ;;  %v1509_v43 = vsel %vm3852_vm7, %v1507_v46, %v1482_v58  ;;  %v1773_v10 = vsel %vm1500_vm12, %v1771_v63, %v1722_v59  ;;  %v2168_v63 = vld [vmem:[%s3827_s8 + $0x20] sm:$0xff]  ;;  %v2173_v30 = vld [vmem:[%s3827_s8 + $0x48] sm:$0xff]  ;;  %v2175_v42 = vld [vmem:[%s3827_s8 + $0x58] sm:$0xff] }
0x1806   :  { %v1698_v51 = vrot.slane %v1684_v37, %v3521_v45  ;;  %2567 = vmatpush3.xpose.msk.msra.mxu0 %vm3853_vm8, %v3672_v32  ;;  %v1762_v22 = vrot.slane %v1691_v49, %v3048_v38  ;;  %v1775_v5 = vsel %vm3854_vm9, %v1773_v10, %v3583_v53  ;;  %v1772_v8 = vsel %vm3855_vm6, %v1770_v7, %v1716_v9  ;;  %v2170_v7 = vld [vmem:[%s3827_s8 + $0x30] sm:$0xff]  ;;  %v2176_v49 = vld [vmem:[%s3827_s8 + $0x60] sm:$0xff]  ;;  %v2177_v61 = vld [vmem:[%s3827_s8 + $0x68] sm:$0xff] }
0x1807   :  { %v1746_v13 = vrot.slane %v1652_v56, %v3048_v38  ;;  %2571 = vmatprep.subr.mxu0 %v2874_v0  ;;  %v1777_v1 = vsel %vm1505_vm13, %v1775_v5, %v1742_v48  ;;  %v1774_v58 = vsel %vm1500_vm12, %v1772_v8, %v1726_v20  ;;  %v3702_v9 = vsel %vm1510_vm14, %v1509_v43, %v1492_v11  ;;  %vm3859_vm12 = vmmov %vm3853_vm8  ;;  %v2178_v11 = vld [vmem:[%s3827_s8 + $0x70] sm:$0xff]  ;;  %v2179_v43 = vld [vmem:[%s3827_s8 + $0x78] sm:$0xff] }
0x1808   :  { %v1779_v45 = vsel %vm3856_vm10, %v1777_v1, %v3599_v2  ;;  %v1766_v14 = vrot.slane %v1698_v51, %v3048_v38  ;;  %v1776_v53 = vsel %vm3857_vm11, %v1774_v58, %v1736_v34  ;;  %v2880_v62 = vmov 0.0|0.0   ;;  %vm3866_vm4 = vmmov %vm3861_vm2 }
0x1809   :  { %2569 = vmatmul.mubr.msk.f32.vlgmr.msra.gmra.mrb[10].mxu0 %vm3858_vm15, %v3672_v32  ;;  %v3705_v18 = vsel %vm1510_vm14, %v1779_v45, %v1762_v22  ;;  %v1778_v2 = vsel %vm1505_vm13, %v1776_v53, %v1746_v13  ;;  %vm1929_vm13 = vcmask 64512   ;;  %2645 = vmatprep.subr.bf16.mxu1 %v2880_v62  ;;  %v2646_v27 = vpack.c.bf16 %v2165_v4, %v2164_v55  ;;  %vm3868_vm11 = vmmov %vm3861_vm2 }
0x180a   :  { %2572 = vmatpush3.xpose.msk.msra.mxu0 %vm3859_vm12, %v3702_v9  ;;  %2573 = vmatprep.mubr.msk.f32.mxu0 %vm3839_vm3, %v2874_v0  ;;  %v1780_v38 = vsel %vm3860_vm0, %v1778_v2, %v1756_v12  ;;  %v2652_v3 = vpack.c.bf16 %v2169_v47, %v2168_v63  ;;  %v2655_v54 = vpack.c.bf16 %v2171_v17, %v2170_v7  ;;  %vm3865_vm1 = vcmask 1041409  }
0x180b   :  { %2576 = vmatprep.subr.mxu0 %v2874_v0  ;;  %v3715_v33 = vsel %vm1510_vm14, %v1780_v38, %v1766_v14  ;;  %2647 = vmatpush3.bf16.msra.mxu1 %v2646_v27  ;;  %v2658_v57 = vpack.c.bf16 %v2173_v30, %v2172_v50  ;;  %v2661_v37 = vpack.c.bf16 %v2175_v42, %v2174_v6  ;;  %vm3863_vm14 = vmmov %vm3861_vm2 }
0x180c   :  { %2648 = vmatprep.subr.bf16.mxu1 %v2880_v62  ;;  %v2664_v46 = vpack.c.bf16 %v2177_v61, %v2176_v49  ;;  %v2667_v10 = vpack.c.bf16 %v2179_v43, %v2178_v11  ;;  %vm3867_vm10 = vmmov %vm3865_vm1 }
0x180d   :  { %2574 = vmatmul.mubr.msk.f32.vlgmr.msra.gmra.mrb[24].mxu0 %vm3861_vm2, %v3702_v9 }
0x180e   :  { %2577 = vmatpush3.msra.mxu0 %v3672_v32  ;;  %2578 = vmatprep.mubr.msk.f32.mxu0 %vm3839_vm3, %v2874_v0 }
0x180f   :  { %2581 = vmatprep.subr.mxu0 %v2874_v0 }
0x18dc   :  { %v1852_v34 = vpop.f32.mrb[10].mxu0 }
0x18dd   :  { %v2570_v41 = vpop.f32.mrb[11].mxu0  ;;  %v1930_v21 = vsel %vm1929_vm13, %v1852_v34, -inf }
0x18de   :  { %1931 = vmax.xlane.f32.xlu0 %v1930_v21 }
0x18e0   :  { %v1925_v59 = vpop.f32.mrb[24].mxu0 }
0x18e1   :  { %v2575_v15 = vpop.f32.mrb[25].mxu0  ;;  %v1933_v16 = vsel %vm1929_vm13, %v1925_v59, -inf }
0x18e2   :  { %1934 = vmax.xlane.f32.xlu1 %v1933_v16 }
0x196b   :  { %v1932_v36 = vpop.xlane.xlu0 %1931 }
0x196c   :  { %v1936_v31 = vsub.f32 %v1852_v34, %v1932_v36 }
0x196e   :  { %v1938_v19 = vmul.f32 1.442695, %v1936_v31 }
0x196f   :  { %v1935_v28 = vpop.xlane.xlu1 %1934 }
0x1970   :  { %2733 = vpow2.f32 %v1938_v19  ;;  %v1937_v35 = vsub.f32 %v1925_v59, %v1935_v28 }
0x1972   :  { %v1940_v20 = vmul.f32 1.442695, %v1937_v35 }
0x1974   :  { %2735 = vpow2.f32 %v1940_v20 }
0x197a   :  { %v2734_v25 = vpop.eup %2733 }
0x197b   :  { %v1942_v56 = vsel %vm1929_vm13, %v2734_v25, 0.0 }
0x197c   :  { %1943 = vadd.xlane.f32.xlu0 %v1942_v56 }
0x197e   :  { %v2736_v29 = vpop.eup %2735 }
0x197f   :  { %v1945_v23 = vsel %vm1929_vm13, %v2736_v29, 0.0 }
0x1980   :  { %1946 = vadd.xlane.f32.xlu0 %v1945_v23 }
0x1a09   :  { %v1944_v39 = vpop.xlane.xlu0 %1943 }
0x1a0a   :  { %2737 = vrcp.f32 %v1944_v39 }
0x1a0d   :  { %v1947_v44 = vpop.xlane.xlu0 %1946 }
0x1a0e   :  { %2739 = vrcp.f32 %v1947_v44 }
0x1a14   :  { %v2738_v24 = vpop.eup %2737 }
0x1a15   :  { %v1950_v48 = vmul.f32 %v2738_v24, %v2734_v25 }
0x1a17   :  { %2579 = vmatmul.mubr.msk.f32.vlgmr.msra.gmra.mrb[26].mxu0 %vm1929_vm13, %v1950_v48 }
0x1a18   :  { %v2740_v52 = vpop.eup %2739  ;;  %2582 = vmatpush3.msra.mxu0 %v3702_v9  ;;  %2583 = vmatprep.mubr.msk.f32.mxu0 %vm3839_vm3, %v2874_v0  ;;  %v2167_v0 = vld [vmem:[%s3827_s8 + $0x18] sm:$0xff]  ;;  %vm3862_vm3 = vmmov %vm3861_vm2  ;;  %s2881_s8 = smov [#allocation9]  }
0x1a19   :  { %v1951_v26 = vmul.f32 %v2740_v52, %v2736_v29  ;;  %v2649_v40 = vpack.c.bf16 %v2167_v0, %v2166_v60  ;;  %s2281_s21 = sshll.u32 %s2881_s8, 4  ;;  %s2282_s21 = int_to_ptr.vmem [resolvable:$true] %s2281_s21 }
0x1a1a   :  { %s2815_s7 = scalar_lea.vmem %s2282_s21, 32  ;;  %p2820_p11 = scmp.lt.s32.totalorder %s2282_s21, %s2282_s21 }
0x1a1b   :  { %2584 = vmatmul.mubr.msk.f32.vlgmr.msra.gmra.mrb[28].mxu0 %vm1929_vm13, %v1951_v26  ;;  %2650 = vmatpush3.bf16.msra.mxu1 %v2649_v40  ;;  %p2816_p10 = scmp.ne.s32.totalorder %s2282_s21, %s2815_s7  ;;  %p2821_p12 = scmp.lt.s32.totalorder %s2815_s7, %s2815_s7 }
0x1a1c   :  { %2651 = vmatprep.subr.bf16.mxu1 %v2880_v62 }
0x1a1d   :  { %p2822_p13 = por %p2821_p12, %p2820_p11 }
0x1a1f   :  { %2653 = vmatpush3.bf16.msra.mxu1 %v2652_v3  ;;  %p2823_p0 = pnand %p2822_p13, %p2816_p10 }
0x1a20   :  { %2654 = vmatprep.subr.bf16.mxu1 %v2880_v62 }
0x1a23   :  { %2656 = vmatpush3.bf16.msra.mxu1 %v2655_v54 }
0x1a24   :  { %2657 = vmatprep.subr.bf16.mxu1 %v2880_v62 }
0x1a27   :  { %2659 = vmatpush3.bf16.msra.mxu1 %v2658_v57 }
0x1a28   :  { %2660 = vmatprep.subr.bf16.mxu1 %v2880_v62 }
0x1a2b   :  { %2662 = vmatpush3.bf16.msra.mxu1 %v2661_v37 }
0x1a2c   :  { %2663 = vmatprep.subr.bf16.mxu1 %v2880_v62 }
0x1a2f   :  { %2665 = vmatpush3.bf16.msra.mxu1 %v2664_v46 }
0x1a30   :  { %2666 = vmatprep.subr.bf16.mxu1 %v2880_v62 }
0x1a33   :  { %2668 = vmatpush3.bf16.msra.mxu1 %v2667_v10 }
0x1aea   :  { %v2021_v51 = vpop.f32.mrb[26].mxu0 }
0x1aeb   :  { %v2098_v22 = vadd.f32 %v2021_v51, %v3672_v32  ;;  %v2580_v5 = vpop.f32.mrb[27].mxu0 }
0x1aed   :  { %v2100_v8 = vadd.f32 %v2098_v22, %v3705_v18 }
0x1aee   :  { %v2094_v13 = vpop.f32.mrb[28].mxu0 }
0x1aef   :  { %v2102_v1 = vsel %vm3862_vm3, %v2100_v8, 0.0  ;;  %v2099_v58 = vadd.f32 %v2094_v13, %v3702_v9  ;;  %v2585_v45 = vpop.f32.mrb[29].mxu0 }
0x1af0   :  { %v2103_v12 = vrot.slane %v2102_v1, 4 }
0x1af1   :  { %v2101_v14 = vadd.f32 %v2099_v58, %v3715_v33 }
0x1af2   :  { %v2104_v53 = vadd.f32 %v2103_v12, %v2102_v1 }
0x1af3   :  { %v2109_v2 = vsel %vm3863_vm14, %v2101_v14, 0.0 }
0x1af4   :  { %v2105_v38 = vrot.slane %v2104_v53, 2  ;;  %v2110_v34 = vrot.slane %v2109_v2, 4 }
0x1af6   :  { %v2106_v41 = vadd.f32 %v2105_v38, %v2104_v53  ;;  %v2111_v21 = vadd.f32 %v2110_v34, %v2109_v2 }
0x1af8   :  { %v2107_v32 = vrot.slane %v2106_v41, 1  ;;  %v2112_v59 = vrot.slane %v2111_v21, 2 }
0x1afa   :  { %v2108_v15 = vadd.f32 %v2107_v32, %v2106_v41  ;;  %v2113_v18 = vadd.f32 %v2112_v59, %v2111_v21 }
0x1afc   :  { %v2116_v16 = vmul.f32 0.125, %v2108_v15  ;;  %v2114_v36 = vrot.slane %v2113_v18, 1 }
0x1afe   :  { %v2118_v31 = vsub.f32 %v2100_v8, %v2116_v16  ;;  %v2115_v19 = vadd.f32 %v2114_v36, %v2113_v18 }
0x1b00   :  { %v2120_v9 = vmul.f32 %v2118_v31, %v2118_v31  ;;  %v2117_v28 = vmul.f32 0.125, %v2115_v19 }
0x1b02   :  { %v2122_v35 = vsel %vm3864_vm5, %v2120_v9, 0.0  ;;  %v2119_v33 = vsub.f32 %v2101_v14, %v2117_v28  ;;  %v2154_v20 = vsel %vm3865_vm1, %v2117_v28, %v2116_v16 }
0x1b03   :  { %v2123_v25 = vrot.slane %v2122_v35, 4 }
0x1b04   :  { %v2121_v56 = vmul.f32 %v2119_v33, %v2119_v33 }
0x1b05   :  { %v2124_v29 = vadd.f32 %v2123_v25, %v2122_v35 }
0x1b06   :  { %v2129_v23 = vsel %vm3866_vm4, %v2121_v56, 0.0 }
0x1b07   :  { %v2125_v39 = vrot.slane %v2124_v29, 2  ;;  %v2130_v44 = vrot.slane %v2129_v23, 4 }
0x1b09   :  { %v2126_v24 = vadd.f32 %v2125_v39, %v2124_v29  ;;  %v2131_v48 = vadd.f32 %v2130_v44, %v2129_v23 }
0x1b0b   :  { %v2127_v52 = vrot.slane %v2126_v24, 1  ;;  %v2132_v26 = vrot.slane %v2131_v48, 2 }
0x1b0d   :  { %v2128_v55 = vadd.f32 %v2127_v52, %v2126_v24  ;;  %v2133_v4 = vadd.f32 %v2132_v26, %v2131_v48 }
0x1b0f   :  { %v2136_v60 = vmul.f32 0.14285715, %v2128_v55  ;;  %v2134_v62 = vrot.slane %v2133_v4, 1 }
0x1b11   :  { %v2135_v27 = vadd.f32 %v2134_v62, %v2133_v4  ;;  %2741 = vrsqrt.f32 %v2136_v60  ;;  %vm2140_vm7 = vcmp.eq.f32.partialorder %v2136_v60, inf  ;;  %v2143_v17 = vand.u32 2147483648, %v2136_v60 }
0x1b12   :  { %vm2142_vm9 = vcmp.eq.f32.partialorder %v2136_v60, 0.0 }
0x1b13   :  { %v2137_v0 = vmul.f32 0.14285715, %v2135_v27 }
0x1b15   :  { %2743 = vrsqrt.f32 %v2137_v0  ;;  %vm2147_vm8 = vcmp.eq.f32.partialorder %v2137_v0, inf  ;;  %v2150_v54 = vand.u32 2147483648, %v2137_v0  ;;  %vm2149_vm6 = vcmp.eq.f32.partialorder %v2137_v0, 0.0 }
0x1b1b   :  { %v2742_v40 = vpop.eup %2741 }
0x1b1c   :  { %v2139_v63 = vmul.f32 %v2742_v40, %v2136_v60 }
0x1b1e   :  { %v2141_v3 = vsel %vm2140_vm7, %v2136_v60, %v2139_v63 }
0x1b1f   :  { %v2744_v47 = vpop.eup %2743  ;;  %v2144_v30 = vsel %vm2142_vm9, %v2143_v17, %v2141_v3 }
0x1b20   :  { %v2146_v7 = vmul.f32 %v2744_v47, %v2137_v0 }
0x1b22   :  { %v2148_v50 = vsel %vm2147_vm8, %v2137_v0, %v2146_v7 }
0x1b23   :  { %v2151_v57 = vsel %vm2149_vm6, %v2150_v54, %v2148_v50 }
0x1b24   :  { %v2158_v6 = vsel %vm3867_vm10, %v2151_v57, %v2144_v30 }
0x1b25   :  { %2159 = vrot.lane.b32.xlu1 %v2158_v6, %s2875_s6 }
0x1b97   :  { %v2160_v42 = vpop.permute.xlu1 %2159 }
0x1b98   :  { %v2162_v37 = vsel %vm3868_vm11, %v2154_v20, %v2160_v42 }
0x1b99   :  { %2163 = vst [vmem:[#allocation9] sm:$0x3] %v2162_v37  ;;  %2619 = vmatmul.mubr.f32.vlgmr.msra.gmra.mrb[16].mxu1 %v2162_v37 }
0x1b9a   :  { %2826 = shalt.err (!%p2823_p0)
}
0x1b9b   :  { %s2827_s22 = scalar_lea.hbm %s3830_s11, 32 }
0x1b9c   :  { %p2828_p1 = scmp.ne.s32.totalorder %s3830_s11, %s2827_s22  ;;  %p2831_p2 = scmp.lt.u32.totalorder %s2827_s22, %s3830_s11 }
0x1b9e   :  { %p2833_p3 = pnand %p2831_p2, %p2828_p1 }
0x1ba0   :  { %2836 = shalt.err (!%p2833_p3)
}
0x1ba1   :  { %2284 = dma.vmem_to_hbm [thread:$0]  %s2282_s21, 32, %s3830_s11, [#allocation10]   ;;  %v2325_v49 = vld [vmem:[%s3828_s9] ss:$0 sm:$0xff]  ;;  %vm2263_vm15 = vcmask 33792  }
0x1ba2   :  { %s2882_s30 = smov [#allocation8]  }
0x1ba3   :  { %s2271_s0 = sshll.u32 %s2882_s30, 4  ;;  %s2272_s0 = int_to_ptr.vmem [resolvable:$true] %s2271_s0 }
0x1ba4   :  { %s2837_s2 = scalar_lea.vmem %s2272_s0, 32  ;;  %p2842_p5 = scmp.lt.s32.totalorder %s2272_s0, %s2272_s0 }
0x1ba5   :  { %p2838_p4 = scmp.ne.s32.totalorder %s2272_s0, %s2837_s2  ;;  %p2843_p6 = scmp.lt.s32.totalorder %s2837_s2, %s2837_s2 }
0x1ba7   :  { %p2844_p7 = por %p2843_p6, %p2842_p5 }
0x1ba9   :  { %p2845_p8 = pnand %p2844_p7, %p2838_p4 }
0x1c6c   :  { %v2253_v61 = vpop.f32.mrb[16].mxu1 }
0x1c6d   :  { %v2254_v46 = vadd.f32 %v2325_v49, %v2253_v61  ;;  %v2620_v11 = vpop.f32.mrb[17].mxu1 }
0x1c6f   :  { %v2326_v43 = vmul.f32 -1.442695, %v2254_v46 }
0x1c71   :  { %2745 = vpow2.f32 %v2326_v43 }
0x1c7b   :  { %v2746_v10 = vpop.eup %2745 }
0x1c7c   :  { %v2260_v51 = vadd.f32 1.0, %v2746_v10 }
0x1c7e   :  { %2747 = vrcp.f32 %v2260_v51 }
0x1c88   :  { %v2748_v22 = vpop.eup %2747 }
0x1c89   :  { %2264 = vst.msk [vmem:[#allocation8] sm:$0x3] %vm2263_vm15, %v2748_v22 }
0x1c8a   :  { %2848 = shalt.err (!%p2845_p8)
}
0x1c8b   :  { %s2849_s5 = scalar_lea.hbm %s3829_s10, 32 }
0x1c8c   :  { %p2850_p9 = scmp.ne.s32.totalorder %s3829_s10, %s2849_s5  ;;  %p2853_p10 = scmp.lt.u32.totalorder %s2849_s5, %s3829_s10 }
0x1c8e   :  { %p2855_p11 = pnand %p2853_p10, %p2850_p9 }
0x1c90   :  { %2858 = shalt.err (!%p2855_p11)
}
0x1c91   :  { %2274 = dma.vmem_to_hbm [thread:$0]  %s2272_s0, 32, %s3829_s10, [#allocation4]  }
0x1c92   :  { %2863 = dma.done.wait [#allocation4], 32  }
0x1c93   :  { %2864 = vsyncadd [#allocation4], 4294967264 }
0x1c94   :  { %2865 = dma.done.wait [#allocation10], 32  }
0x1c95   :  { %2866 = vsyncadd [#allocation10], 4294967264 }
0x1c96   :  { %2291 = vsyncpa [#allocation3], 1 }
0x1c97   :  { %2292 = vsyncpa [#allocation6], 1 }
0x1c98   :  { %2293 = vsyncpa [#allocation4], 1 }
0x1c99   :  { %2294 = vsyncpa [#allocation10], 1 }

</bundles_post_ra>
